<compile_context>
chip_gen: v7x
topology: tpu7x:2x2x1
jax: 0.10.0
libtpu: 0.0.40
codegen_flags: <defaults>
</compile_context>

<pallas_src>
import functools
import math

import jax
import jax.numpy as jnp
from jax.experimental import pallas as pl
from jax.experimental.pallas import tpu as pltpu


# ---------------------------------------------------------------------------
# helpers
# ---------------------------------------------------------------------------

_VMEM_LIMIT = 32 * 1024 * 1024  # safe scoped-VMEM limit on v5e/v6e/v7x


def _cparams(*sem):
    return pltpu.CompilerParams(dimension_semantics=tuple(sem),
                                vmem_limit_bytes=_VMEM_LIMIT)


def _pick_tile(dim, desired, align):
    """Largest tile <= desired that divides `dim` and is a multiple of `align`,
    else the full dim (full dims are always legal block shapes)."""
    if dim <= desired or dim % align:
        return dim
    t = (desired // align) * align
    while t >= align:
        if dim % t == 0:
            return t
        t -= align
    return dim


def _apply_act(y, act):
    if act == "relu":
        return jnp.maximum(y, 0.0)
    if act == "swish":
        return y * jax.nn.sigmoid(y)
    return y


# ---------------------------------------------------------------------------
# Pallas kernels
# ---------------------------------------------------------------------------

def _mm_kernel(x_ref, w_ref, b_ref, o_ref, acc_ref, *, act):
    """K-reduction tiled matmul: o = act(x @ w + b)."""
    @pl.when(pl.program_id(2) == 0)
    def _init():
        acc_ref[...] = jnp.zeros_like(acc_ref)

    acc_ref[...] += jnp.dot(x_ref[...].astype(jnp.bfloat16), w_ref[...],
                            preferred_element_type=jnp.float32)

    @pl.when(pl.program_id(2) == pl.num_programs(2) - 1)
    def _fin():
        o_ref[...] = _apply_act(acc_ref[...] + b_ref[...], act)


def _ln_mm_kernel(x_ref, g_ref, be_ref, w_ref, b_ref, o_ref, *, eps, act):
    """Fused LayerNorm(x) @ w + b (full-K block; K = d_model)."""
    x = x_ref[...]
    mean = jnp.mean(x, axis=-1, keepdims=True)
    var = jnp.mean(jnp.square(x - mean), axis=-1, keepdims=True)
    xn = (x - mean) * jax.lax.rsqrt(var + eps) * g_ref[...] + be_ref[...]
    y = jnp.dot(xn.astype(jnp.bfloat16), w_ref[...],
                preferred_element_type=jnp.float32) + b_ref[...]
    o_ref[...] = _apply_act(y, act)


def _ln_ffn_kernel(x_ref, g_ref, be_ref, w1_ref, b1_ref, w2_ref, b2_ref, o_ref, *, eps):
    """Fused FFN sub-block: o = x + W2(swish(W1(LN(x)) + b1)) + b2."""
    x = x_ref[...]
    mean = jnp.mean(x, axis=-1, keepdims=True)
    var = jnp.mean(jnp.square(x - mean), axis=-1, keepdims=True)
    xn = (x - mean) * jax.lax.rsqrt(var + eps) * g_ref[...] + be_ref[...]
    h = jnp.dot(xn.astype(jnp.bfloat16), w1_ref[...],
                preferred_element_type=jnp.float32) + b1_ref[...]
    h = h * jax.nn.sigmoid(h)                                   # swish
    y = jnp.dot(h.astype(jnp.bfloat16), w2_ref[...],
                preferred_element_type=jnp.float32) + b2_ref[...]
    o_ref[...] = x + y                                          # residual = pre-LN input


def _attn_proj_kernel(qkv_ref, m_ref, x_ref, wo_ref, bo_ref, o_ref,
                      *, n_heads, dk, scale):
    """Per-batch self-attention (all heads) fused with output projection + residual.

    o[b] = x[b] + bo + sum_h softmax(q_h k_h^T * scale, mask) v_h @ Wo[h*dk:(h+1)*dk]
    Folding each head through its Wo row-slice keeps every store lane-dense (T, d).
    """
    # TODO(synk): flash-style KV tiling (online softmax) for long T to bound VMEM.
    qkv = qkv_ref[0]                        # (T, 3*d) f32
    valid = m_ref[0] > 0.5                  # (1, T) bool, key-position mask
    wo = wo_ref[...]                        # (d, d) bf16
    d = n_heads * dk
    neg = jnp.finfo(jnp.float32).min
    acc = x_ref[0] + bo_ref[...]            # (T, d) f32 (bias broadcasts over rows)
    for h in range(n_heads):
        q = qkv[:, h * dk:(h + 1) * dk].astype(jnp.bfloat16)
        k = qkv[:, d + h * dk:d + (h + 1) * dk].astype(jnp.bfloat16)
        v = qkv[:, 2 * d + h * dk:2 * d + (h + 1) * dk].astype(jnp.bfloat16)
        # NT matmul: contract last dims directly (no explicit k.T)
        s = jax.lax.dot_general(q, k, (((1,), (1,)), ((), ())),
                                preferred_element_type=jnp.float32) * scale
        s = jnp.where(valid, s, neg)
        s = s - jnp.max(s, axis=-1, keepdims=True)
        e = jnp.exp(s)
        p = e * pl.reciprocal(jnp.sum(e, axis=-1, keepdims=True), approx=True)
        p = jnp.where(valid, p, 0.0)        # matches torch masked_fill(.., 0.0)
        ctx = jax.lax.dot_general(p.astype(jnp.bfloat16), v, (((1,), (0,)), ((), ())),
                                  preferred_element_type=jnp.float32)
        acc = acc + jax.lax.dot_general(ctx.astype(jnp.bfloat16),
                                        wo[h * dk:(h + 1) * dk, :],
                                        (((1,), (0,)), ((), ())),
                                        preferred_element_type=jnp.float32)
    o_ref[0] = acc


def _ln_kernel(x_ref, g_ref, b_ref, o_ref, *, eps):
    x = x_ref[...]
    mean = jnp.mean(x, axis=-1, keepdims=True)
    var = jnp.mean(jnp.square(x - mean), axis=-1, keepdims=True)
    o_ref[...] = (x - mean) * jax.lax.rsqrt(var + eps) * g_ref[...] + b_ref[...]


# ---------------------------------------------------------------------------
# Wrappers
# ---------------------------------------------------------------------------

def pallas_matmul(x, w_bf16, b, *, act="none", tm=256, tn=256, tk=512):
    """y = act(x @ w + b).  x:(M,K) f32, w:(K,N) bf16, b:(N,)."""
    M, K = x.shape
    N = w_bf16.shape[1]
    tm = _pick_tile(M, tm, 8)
    tn = _pick_tile(N, tn, 128)
    tk = _pick_tile(K, tk, 128)
    grid = (M // tm, N // tn, K // tk)
    b2 = b.reshape(1, N).astype(jnp.float32)

    bytes_acc = (M * K * 4 + K * N * 2 + M * N * 4 + N * 4)
    return pl.pallas_call(
        functools.partial(_mm_kernel, act=act),
        grid=grid,
        in_specs=[
            pl.BlockSpec((tm, tk), lambda i, j, k: (i, k)),
            pl.BlockSpec((tk, tn), lambda i, j, k: (k, j)),
            pl.BlockSpec((1, tn), lambda i, j, k: (0, j)),
        ],
        out_specs=pl.BlockSpec((tm, tn), lambda i, j, k: (i, j)),
        out_shape=jax.ShapeDtypeStruct((M, N), jnp.float32),
        scratch_shapes=[pltpu.VMEM((tm, tn), jnp.float32)],
        compiler_params=_cparams("parallel", "parallel", "arbitrary"),
        cost_estimate=pl.CostEstimate(
            flops=2 * M * N * K,
            transcendentals=(M * N if act == "swish" else 0),
            bytes_accessed=bytes_acc),
    )(x, w_bf16, b2)


def pallas_ln_matmul(x, g, be, w_bf16, b, *, act="none", tm=256, tn=256, eps=1e-12):
    """y = act(LayerNorm(x) @ w + b).  Full-K blocks (K = d_model)."""
    M, K = x.shape
    N = w_bf16.shape[1]
    tm = _pick_tile(M, tm, 8)
    tn = _pick_tile(N, tn, 128)
    grid = (M // tm, N // tn)
    return pl.pallas_call(
        functools.partial(_ln_mm_kernel, eps=eps, act=act),
        grid=grid,
        in_specs=[
            pl.BlockSpec((tm, K), lambda i, j: (i, 0)),
            pl.BlockSpec((1, K), lambda i, j: (0, 0)),
            pl.BlockSpec((1, K), lambda i, j: (0, 0)),
            pl.BlockSpec((K, tn), lambda i, j: (0, j)),
            pl.BlockSpec((1, tn), lambda i, j: (0, j)),
        ],
        out_specs=pl.BlockSpec((tm, tn), lambda i, j: (i, j)),
        out_shape=jax.ShapeDtypeStruct((M, N), jnp.float32),
        compiler_params=_cparams("parallel", "parallel"),
        cost_estimate=pl.CostEstimate(
            flops=2 * M * N * K,
            transcendentals=(M * N if act == "swish" else 0),
            bytes_accessed=M * K * 4 + K * N * 2 + M * N * 4),
    )(x, g.reshape(1, K).astype(jnp.float32), be.reshape(1, K).astype(jnp.float32),
      w_bf16, b.reshape(1, N).astype(jnp.float32))


def pallas_ln_ffn(x, g, be, w1_bf16, b1, w2_bf16, b2, *, tm=128, eps=1e-12):
    """Fused FFN sub-block: x + W2(swish(W1(LN(x))))."""
    M, D = x.shape
    F = w1_bf16.shape[1]
    tm = _pick_tile(M, tm, 8)
    grid = (M // tm,)
    return pl.pallas_call(
        functools.partial(_ln_ffn_kernel, eps=eps),
        grid=grid,
        in_specs=[
            pl.BlockSpec((tm, D), lambda i: (i, 0)),
            pl.BlockSpec((1, D), lambda i: (0, 0)),
            pl.BlockSpec((1, D), lambda i: (0, 0)),
            pl.BlockSpec((D, F), lambda i: (0, 0)),
            pl.BlockSpec((1, F), lambda i: (0, 0)),
            pl.BlockSpec((F, D), lambda i: (0, 0)),
            pl.BlockSpec((1, D), lambda i: (0, 0)),
        ],
        out_specs=pl.BlockSpec((tm, D), lambda i: (i, 0)),
        out_shape=jax.ShapeDtypeStruct((M, D), jnp.float32),
        compiler_params=_cparams("parallel"),
        cost_estimate=pl.CostEstimate(
            flops=4 * M * D * F,
            transcendentals=M * F,
            bytes_accessed=M * D * 8 + D * F * 4),
    )(x, g.reshape(1, D).astype(jnp.float32), be.reshape(1, D).astype(jnp.float32),
      w1_bf16, b1.reshape(1, F).astype(jnp.float32),
      w2_bf16, b2.reshape(1, D).astype(jnp.float32))


def pallas_attention_proj(qkv, mask3, x, wo_bf16, bo, n_heads):
    """Attention + output projection + residual, fused per batch element.

    qkv: (B, T, 3d) packed [q|k|v]; mask3: (B, 1, T) float (1 = valid key);
    x: (B, T, d) residual input. Returns (B, T, d).
    """
    B, T, d3 = qkv.shape
    d = d3 // 3
    dk = d // n_heads
    scale = 1.0 / math.sqrt(dk)
    return pl.pallas_call(
        functools.partial(_attn_proj_kernel, n_heads=n_heads, dk=dk, scale=scale),
        grid=(B,),
        in_specs=[
            pl.BlockSpec((1, T, d3), lambda b: (b, 0, 0)),
            pl.BlockSpec((1, 1, T), lambda b: (b, 0, 0)),   # mask, un-broadcast
            pl.BlockSpec((1, T, d), lambda b: (b, 0, 0)),
            pl.BlockSpec((d, d), lambda b: (0, 0)),
            pl.BlockSpec((1, d), lambda b: (0, 0)),
        ],
        out_specs=pl.BlockSpec((1, T, d), lambda b: (b, 0, 0)),
        out_shape=jax.ShapeDtypeStruct((B, T, d), jnp.float32),
        compiler_params=_cparams("parallel"),
        cost_estimate=pl.CostEstimate(
            flops=B * (4 * T * T * d + 2 * T * d * d),
            transcendentals=B * n_heads * T * T,
            bytes_accessed=B * T * (d3 + 2 * d) * 4 + B * T * 4 + d * d * 2),
    )(qkv, mask3, x, wo_bf16, bo.reshape(1, d).astype(jnp.float32))


def pallas_layernorm(x, g, b, *, eps=1e-12, tm=256):
    M, D = x.shape
    tm = _pick_tile(M, tm, 8)
    return pl.pallas_call(
        functools.partial(_ln_kernel, eps=eps),
        grid=(M // tm,),
        in_specs=[
            pl.BlockSpec((tm, D), lambda i: (i, 0)),
            pl.BlockSpec((1, D), lambda i: (0, 0)),
            pl.BlockSpec((1, D), lambda i: (0, 0)),
        ],
        out_specs=pl.BlockSpec((tm, D), lambda i: (i, 0)),
        out_shape=jax.ShapeDtypeStruct((M, D), jnp.float32),
        compiler_params=_cparams("parallel"),
    )(x, g.reshape(1, D).astype(jnp.float32), b.reshape(1, D).astype(jnp.float32))


# ---------------------------------------------------------------------------
# Conv2dSubsampling glue (im2col in XLA, matmuls in Pallas), pos-enc, params
# ---------------------------------------------------------------------------

def _im2col(x, k=3, stride=2):
    """x: (B, H, W, C) -> patches (B, Ho, Wo, k*k*C) ordered (kh, kw, c)."""
    # TODO(synk): fuse the 3x3 stride-2 conv as 9 shifted matmul-accumulates inside one
    #             kernel to avoid the 9x im2col HBM expansion at large input sizes.
    B, H, W, C = x.shape
    Ho = (H - k) // stride + 1
    Wo = (W - k) // stride + 1
    cols = []
    for kh in range(k):
        for kw in range(k):
            cols.append(x[:, kh:kh + stride * Ho:stride, kw:kw + stride * Wo:stride, :])
    return jnp.concatenate(cols, axis=-1), Ho, Wo


def conv2d_stride2(x, w_mat_bf16, b, out_ch):
    """3x3 stride-2 valid conv + ReLU via im2col + tiled Pallas matmul."""
    patches, Ho, Wo = _im2col(x)
    B = x.shape[0]
    kkc = patches.shape[-1]
    y = pallas_matmul(patches.reshape(B * Ho * Wo, kkc), w_mat_bf16, b, act="relu")
    return y.reshape(B, Ho, Wo, out_ch), Ho, Wo


def _sinusoidal_pe(T, d):
    pos = jnp.arange(T, dtype=jnp.float32)[:, None]
    div = jnp.exp(jnp.arange(0, d, 2, dtype=jnp.float32) * -(math.log(10000.0) / d))
    pe = jnp.zeros((T, d), jnp.float32)
    pe = pe.at[:, 0::2].set(jnp.sin(pos * div))
    pe = pe.at[:, 1::2].set(jnp.cos(pos * div))
    return pe


def init_params(key, idim, d_model, ff_dim, num_blocks):
    keys = iter(jax.random.split(key, 16 + 16 * num_blocks))

    def w(shape, scale=0.02):
        return scale * jax.random.normal(next(keys), shape, jnp.float32)

    def wm(shape):  # matmul weights stored in HBM as bf16 (f32 accumulation in-kernel)
        return w(shape).astype(jnp.bfloat16)

    def conv_mat(o, i):
        # torch OIHW (o,i,3,3) -> (kh,kw,i,o) flattened (9*i, o); matches im2col order.
        wc = w((o, i, 3, 3))
        return jnp.transpose(wc, (2, 3, 1, 0)).reshape(9 * i, o).astype(jnp.bfloat16)

    f2 = (((idim - 1) // 2) - 1) // 2  # freq dim after 2x conv2d stride-2 subsampling
    p = {
        "conv1_w": conv_mat(d_model, 1), "conv1_b": w((d_model,)),
        "conv2_w": conv_mat(d_model, d_model), "conv2_b": w((d_model,)),
        "embed_lin_w": wm((d_model * f2, d_model)), "embed_lin_b": w((d_model,)),
        "after_norm_g": jnp.ones((d_model,), jnp.float32),
        "after_norm_b": jnp.zeros((d_model,), jnp.float32),
    }
    layers = []
    for _ in range(num_blocks):
        layers.append({
            "norm_mha_g": jnp.ones((d_model,), jnp.float32),
            "norm_mha_b": jnp.zeros((d_model,), jnp.float32),
            # fused QKV projection == concat of torch linear_q/k/v along the output dim
            "w_qkv": wm((d_model, 3 * d_model)), "b_qkv": w((3 * d_model,)),
            "wo": wm((d_model, d_model)), "bo": w((d_model,)),
            "norm_ff_g": jnp.ones((d_model,), jnp.float32),
            "norm_ff_b": jnp.zeros((d_model,), jnp.float32),
            "w1": wm((d_model, ff_dim)), "b1": w((ff_dim,)),
            "w2": wm((ff_dim, d_model)), "b2": w((d_model,)),
        })
    p["layers"] = layers
    return p


# ---------------------------------------------------------------------------
# Encoder forward
# ---------------------------------------------------------------------------

def encoder_layer(x, mask3, lp, n_heads):
    """Pre-LN conformer EncoderLayer (no macaron, no conv module, concat_after=False)."""
    B, T, d = x.shape
    x2 = x.reshape(B * T, d)

    # --- MHSA sub-block: x + W_o(attn(LN(x)))   (fused into two pallas_calls)
    qkv = pallas_ln_matmul(x2, lp["norm_mha_g"], lp["norm_mha_b"],
                           lp["w_qkv"], lp["b_qkv"])                     # (B*T, 3d)
    x = pallas_attention_proj(qkv.reshape(B, T, 3 * d), mask3, x,
                              lp["wo"], lp["bo"], n_heads)               # (B, T, d)

    # --- FFN sub-block (swish, ff_scale = 1.0): x + W2(swish(W1(LN(x))))
    x2 = pallas_ln_ffn(x.reshape(B * T, d), lp["norm_ff_g"], lp["norm_ff_b"],
                       lp["w1"], lp["b1"], lp["w2"], lp["b2"])

    return x2.reshape(B, T, d)


def conformer_encoder_forward(params, xs_pad, ilens, n_heads):
    """xs_pad: (B, L, idim); ilens: (B,).  Returns (xs_out, olens, None)."""
    B, T, idim = xs_pad.shape
    d_model = params["after_norm_g"].shape[0]

    # make_pad_mask -> valid mask (True where t < ilen)
    masks = jnp.arange(T)[None, :] < ilens[:, None]                      # (B, T) bool

    # --- Conv2dSubsampling: two 3x3 stride-2 convs (+ReLU), then linear + pos-enc
    x = xs_pad[:, :, :, None]                                            # (B, T, F, C=1)
    x, T1, F1 = conv2d_stride2(x, params["conv1_w"], params["conv1_b"], d_model)
    x, T2, F2 = conv2d_stride2(x, params["conv2_w"], params["conv2_b"], d_model)
    # torch: (B, C, T2, F2).transpose(1, 2).view(B, T2, C*F2) => flatten order (C, F2)
    x = jnp.transpose(x, (0, 1, 3, 2)).reshape(B, T2, d_model * F2)
    x = pallas_matmul(x.reshape(B * T2, d_model * F2),
                      params["embed_lin_w"], params["embed_lin_b"]).reshape(B, T2, d_model)
    masks = masks[:, :-2:2][:, :-2:2]                                    # (B, T2)

    # --- absolute positional encoding: x * sqrt(d) + pe  (dropout = identity)
    pe = _sinusoidal_pe(T2, d_model)
    x = x * math.sqrt(d_model) + pe[None]

    mask3 = masks.astype(jnp.float32)[:, None, :]                        # (B, 1, T2)
    for lp in params["layers"]:
        x = encoder_layer(x, mask3, lp, n_heads)

    # --- final LayerNorm (normalize_before=True)
    x = pallas_layernorm(x.reshape(B * T2, d_model),
                         params["after_norm_g"],
                         params["after_norm_b"]).reshape(B, T2, d_model)

    olens = masks.sum(axis=1).astype(jnp.int32)
    return x, olens, None


# ---------------------------------------------------------------------------

if __name__ == "__main__":
    # small config consistent with the module: idim=16, attention_dim=32,
    # heads=4, linear_units=64, num_blocks=2, input_layer='conv2d'
    B, T, idim = 2, 16, 16
    d_model, n_heads, ff_dim, num_blocks = 32, 4, 64, 2

    key = jax.random.PRNGKey(0)
    pkey, xkey = jax.random.split(key)
    params = init_params(pkey, idim, d_model, ff_dim, num_blocks)
    xs_pad = jax.random.normal(xkey, (B, T, idim), jnp.float32)
    ilens = jnp.array([16, 12], jnp.int32)

    fwd = jax.jit(functools.partial(conformer_encoder_forward, n_heads=n_heads))
    xs_out, olens, _ = fwd(params, xs_pad, ilens)
    jax.block_until_ready(xs_out)
    jax.block_until_ready(olens)
    assert xs_out.shape == (B, 3, d_model)   # T=16 -> 4x conv subsampling -> 3
    assert bool(jnp.all(jnp.isfinite(xs_out)))
    print("KERNEL_OK")
</pallas_src>

<mosaic_0001>
module attributes {stable_mosaic.version = 11 : i64} {
  func.func @_mm_kernel(%arg0: i32, %arg1: i32, %arg2: i32, %arg3: memref<98x9xf32, #tpu.memory_space<vmem>>, %arg4: memref<9x32xbf16, #tpu.memory_space<vmem>>, %arg5: memref<1x32xf32, #tpu.memory_space<vmem>>, %arg6: memref<98x32xf32, #tpu.memory_space<vmem>>, %arg7: memref<98x32xf32, #tpu.memory_space<vmem>>) attributes {dimension_semantics = [#tpu.dimension_semantics<parallel>, #tpu.dimension_semantics<parallel>, #tpu.dimension_semantics<arbitrary>], iteration_bounds = array<i64: 1, 1, 1>, scalar_prefetch = 0 : i64, scratch_operands = 1 : i64, tpu.core_type = #tpu.core_type<tc>, window_params = [{transform_indices = @transform_0, window_bounds = array<i64: 98, 9>}, {transform_indices = @transform_1, window_bounds = array<i64: 9, 32>}, {transform_indices = @transform_2, window_bounds = array<i64: 1, 32>}, {transform_indices = @transform_3, window_bounds = array<i64: 98, 32>}]} {
    %c0_i32 = arith.constant 0 : i32
    %0 = arith.cmpi eq, %arg2, %c0_i32 : i32
    %1 = arith.extui %0 : i1 to i32
    %c0_i32_0 = arith.constant 0 : i32
    %2 = arith.cmpi ne, %1, %c0_i32_0 : i32
    scf.if %2 {
      %cst_10 = arith.constant 0.000000e+00 : f32
      %13 = vector.broadcast %cst_10 : f32 to vector<98x32xf32>
      %c0_11 = arith.constant 0 : index
      %c0_12 = arith.constant 0 : index
      %14 = vector.load %arg7[%c0_11, %c0_12] : memref<98x32xf32, #tpu.memory_space<vmem>>, vector<98x32xf32>
      tpu.vector_store %arg7[%c0_11, %c0_12], %13 {strides = array<i32>} : memref<98x32xf32, #tpu.memory_space<vmem>>, vector<98x32xf32>,
    } else {
    }
    %c0 = arith.constant 0 : index
    %c0_1 = arith.constant 0 : index
    %3 = vector.load %arg7[%c0, %c0_1] : memref<98x32xf32, #tpu.memory_space<vmem>>, vector<98x32xf32>
    %c0_2 = arith.constant 0 : index
    %c0_3 = arith.constant 0 : index
    %4 = vector.load %arg3[%c0_2, %c0_3] : memref<98x9xf32, #tpu.memory_space<vmem>>, vector<98x9xf32>
    %5 = arith.truncf %4 : vector<98x9xf32> to vector<98x9xbf16>
    %c0_4 = arith.constant 0 : index
    %c0_5 = arith.constant 0 : index
    %6 = vector.load %arg4[%c0_4, %c0_5] : memref<9x32xbf16, #tpu.memory_space<vmem>>, vector<9x32xbf16>
    %cst = arith.constant dense<0.000000e+00> : vector<98x32xf32>
    %7 = tpu.matmul %5, %6, %cst {dimension_numbers = #tpu.dot_dimension_numbers<[1], [0], [0], [1], [0, 0, 1, 1], [], []>} : vector<98x9xbf16>, vector<9x32xbf16>, vector<98x32xf32> -> vector<98x32xf32>
    %8 = arith.addf %3, %7 : vector<98x32xf32>
    %c0_6 = arith.constant 0 : index
    %c0_7 = arith.constant 0 : index
    %9 = vector.load %arg7[%c0_6, %c0_7] : memref<98x32xf32, #tpu.memory_space<vmem>>, vector<98x32xf32>
    tpu.vector_store %arg7[%c0_6, %c0_7], %8 {strides = array<i32>} : memref<98x32xf32, #tpu.memory_space<vmem>>, vector<98x32xf32>,
    %c0_i32_8 = arith.constant 0 : i32
    %10 = arith.cmpi eq, %arg2, %c0_i32_8 : i32
    %11 = arith.extui %10 : i1 to i32
    %c0_i32_9 = arith.constant 0 : i32
    %12 = arith.cmpi ne, %11, %c0_i32_9 : i32
    scf.if %12 {
      %c0_10 = arith.constant 0 : index
      %c0_11 = arith.constant 0 : index
      %13 = vector.load %arg7[%c0_10, %c0_11] : memref<98x32xf32, #tpu.memory_space<vmem>>, vector<98x32xf32>
      %c0_12 = arith.constant 0 : index
      %c0_13 = arith.constant 0 : index
      %14 = vector.load %arg5[%c0_12, %c0_13] : memref<1x32xf32, #tpu.memory_space<vmem>>, vector<1x32xf32>
      %15 = vector.broadcast %14 : vector<1x32xf32> to vector<98x32xf32>
      %16 = arith.addf %13, %15 : vector<98x32xf32>
      %cst_14 = arith.constant 0.000000e+00 : f32
      %17 = vector.broadcast %cst_14 : f32 to vector<98x32xf32>
      %18 = arith.maximumf %16, %17 : vector<98x32xf32>
      %c0_15 = arith.constant 0 : index
      %c0_16 = arith.constant 0 : index
      %19 = vector.load %arg6[%c0_15, %c0_16] : memref<98x32xf32, #tpu.memory_space<vmem>>, vector<98x32xf32>
      tpu.vector_store %arg6[%c0_15, %c0_16], %18 {strides = array<i32>} : memref<98x32xf32, #tpu.memory_space<vmem>>, vector<98x32xf32>,
    } else {
    }
    return
  }
  func.func @transform_0(%arg0: i32, %arg1: i32, %arg2: i32) -> (i32, i32) {
    %c0_i32 = arith.constant 0 : i32
    return %arg0, %arg2 : i32, i32
  }
  func.func @transform_1(%arg0: i32, %arg1: i32, %arg2: i32) -> (i32, i32) {
    %c0_i32 = arith.constant 0 : i32
    return %arg2, %arg1 : i32, i32
  }
  func.func @transform_2(%arg0: i32, %arg1: i32, %arg2: i32) -> (i32, i32) {
    %c0_i32 = arith.constant 0 : i32
    %c0_i32_0 = arith.constant 0 : i32
    return %c0_i32, %arg1 : i32, i32
  }
  func.func @transform_3(%arg0: i32, %arg1: i32, %arg2: i32) -> (i32, i32) {
    %c0_i32 = arith.constant 0 : i32
    return %arg0, %arg1 : i32, i32
  }
}

module attributes {stable_mosaic.version = 11 : i64} {
  func.func @_mm_kernel(%arg0: i32, %arg1: i32, %arg2: i32, %arg3: memref<18x288xf32, #tpu.memory_space<vmem>>, %arg4: memref<288x32xbf16, #tpu.memory_space<vmem>>, %arg5: memref<1x32xf32, #tpu.memory_space<vmem>>, %arg6: memref<18x32xf32, #tpu.memory_space<vmem>>, %arg7: memref<18x32xf32, #tpu.memory_space<vmem>>) attributes {dimension_semantics = [#tpu.dimension_semantics<parallel>, #tpu.dimension_semantics<parallel>, #tpu.dimension_semantics<arbitrary>], iteration_bounds = array<i64: 1, 1, 1>, scalar_prefetch = 0 : i64, scratch_operands = 1 : i64, tpu.core_type = #tpu.core_type<tc>, window_params = [{transform_indices = @transform_0, window_bounds = array<i64: 18, 288>}, {transform_indices = @transform_1, window_bounds = array<i64: 288, 32>}, {transform_indices = @transform_2, window_bounds = array<i64: 1, 32>}, {transform_indices = @transform_3, window_bounds = array<i64: 18, 32>}]} {
    %c0_i32 = arith.constant 0 : i32
    %0 = arith.cmpi eq, %arg2, %c0_i32 : i32
    %1 = arith.extui %0 : i1 to i32
    %c0_i32_0 = arith.constant 0 : i32
    %2 = arith.cmpi ne, %1, %c0_i32_0 : i32
    scf.if %2 {
      %cst_10 = arith.constant 0.000000e+00 : f32
      %13 = vector.broadcast %cst_10 : f32 to vector<18x32xf32>
      %c0_11 = arith.constant 0 : index
      %c0_12 = arith.constant 0 : index
      %14 = vector.load %arg7[%c0_11, %c0_12] : memref<18x32xf32, #tpu.memory_space<vmem>>, vector<18x32xf32>
      tpu.vector_store %arg7[%c0_11, %c0_12], %13 {strides = array<i32>} : memref<18x32xf32, #tpu.memory_space<vmem>>, vector<18x32xf32>,
    } else {
    }
    %c0 = arith.constant 0 : index
    %c0_1 = arith.constant 0 : index
    %3 = vector.load %arg7[%c0, %c0_1] : memref<18x32xf32, #tpu.memory_space<vmem>>, vector<18x32xf32>
    %c0_2 = arith.constant 0 : index
    %c0_3 = arith.constant 0 : index
    %4 = vector.load %arg3[%c0_2, %c0_3] : memref<18x288xf32, #tpu.memory_space<vmem>>, vector<18x288xf32>
    %5 = arith.truncf %4 : vector<18x288xf32> to vector<18x288xbf16>
    %c0_4 = arith.constant 0 : index
    %c0_5 = arith.constant 0 : index
    %6 = vector.load %arg4[%c0_4, %c0_5] : memref<288x32xbf16, #tpu.memory_space<vmem>>, vector<288x32xbf16>
    %cst = arith.constant dense<0.000000e+00> : vector<18x32xf32>
    %7 = tpu.matmul %5, %6, %cst {dimension_numbers = #tpu.dot_dimension_numbers<[1], [0], [0], [1], [0, 0, 1, 1], [], []>} : vector<18x288xbf16>, vector<288x32xbf16>, vector<18x32xf32> -> vector<18x32xf32>
    %8 = arith.addf %3, %7 : vector<18x32xf32>
    %c0_6 = arith.constant 0 : index
    %c0_7 = arith.constant 0 : index
    %9 = vector.load %arg7[%c0_6, %c0_7] : memref<18x32xf32, #tpu.memory_space<vmem>>, vector<18x32xf32>
    tpu.vector_store %arg7[%c0_6, %c0_7], %8 {strides = array<i32>} : memref<18x32xf32, #tpu.memory_space<vmem>>, vector<18x32xf32>,
    %c0_i32_8 = arith.constant 0 : i32
    %10 = arith.cmpi eq, %arg2, %c0_i32_8 : i32
    %11 = arith.extui %10 : i1 to i32
    %c0_i32_9 = arith.constant 0 : i32
    %12 = arith.cmpi ne, %11, %c0_i32_9 : i32
    scf.if %12 {
      %c0_10 = arith.constant 0 : index
      %c0_11 = arith.constant 0 : index
      %13 = vector.load %arg7[%c0_10, %c0_11] : memref<18x32xf32, #tpu.memory_space<vmem>>, vector<18x32xf32>
      %c0_12 = arith.constant 0 : index
      %c0_13 = arith.constant 0 : index
      %14 = vector.load %arg5[%c0_12, %c0_13] : memref<1x32xf32, #tpu.memory_space<vmem>>, vector<1x32xf32>
      %15 = vector.broadcast %14 : vector<1x32xf32> to vector<18x32xf32>
      %16 = arith.addf %13, %15 : vector<18x32xf32>
      %cst_14 = arith.constant 0.000000e+00 : f32
      %17 = vector.broadcast %cst_14 : f32 to vector<18x32xf32>
      %18 = arith.maximumf %16, %17 : vector<18x32xf32>
      %c0_15 = arith.constant 0 : index
      %c0_16 = arith.constant 0 : index
      %19 = vector.load %arg6[%c0_15, %c0_16] : memref<18x32xf32, #tpu.memory_space<vmem>>, vector<18x32xf32>
      tpu.vector_store %arg6[%c0_15, %c0_16], %18 {strides = array<i32>} : memref<18x32xf32, #tpu.memory_space<vmem>>, vector<18x32xf32>,
    } else {
    }
    return
  }
  func.func @transform_0(%arg0: i32, %arg1: i32, %arg2: i32) -> (i32, i32) {
    %c0_i32 = arith.constant 0 : i32
    return %arg0, %arg2 : i32, i32
  }
  func.func @transform_1(%arg0: i32, %arg1: i32, %arg2: i32) -> (i32, i32) {
    %c0_i32 = arith.constant 0 : i32
    return %arg2, %arg1 : i32, i32
  }
  func.func @transform_2(%arg0: i32, %arg1: i32, %arg2: i32) -> (i32, i32) {
    %c0_i32 = arith.constant 0 : i32
    %c0_i32_0 = arith.constant 0 : i32
    return %c0_i32, %arg1 : i32, i32
  }
  func.func @transform_3(%arg0: i32, %arg1: i32, %arg2: i32) -> (i32, i32) {
    %c0_i32 = arith.constant 0 : i32
    return %arg0, %arg1 : i32, i32
  }
}

module attributes {stable_mosaic.version = 11 : i64} {
  func.func @_mm_kernel(%arg0: i32, %arg1: i32, %arg2: i32, %arg3: memref<6x96xf32, #tpu.memory_space<vmem>>, %arg4: memref<96x32xbf16, #tpu.memory_space<vmem>>, %arg5: memref<1x32xf32, #tpu.memory_space<vmem>>, %arg6: memref<6x32xf32, #tpu.memory_space<vmem>>, %arg7: memref<6x32xf32, #tpu.memory_space<vmem>>) attributes {dimension_semantics = [#tpu.dimension_semantics<parallel>, #tpu.dimension_semantics<parallel>, #tpu.dimension_semantics<arbitrary>], iteration_bounds = array<i64: 1, 1, 1>, scalar_prefetch = 0 : i64, scratch_operands = 1 : i64, tpu.core_type = #tpu.core_type<tc>, window_params = [{transform_indices = @transform_0, window_bounds = array<i64: 6, 96>}, {transform_indices = @transform_1, window_bounds = array<i64: 96, 32>}, {transform_indices = @transform_2, window_bounds = array<i64: 1, 32>}, {transform_indices = @transform_3, window_bounds = array<i64: 6, 32>}]} {
    %c0_i32 = arith.constant 0 : i32
    %0 = arith.cmpi eq, %arg2, %c0_i32 : i32
    %1 = arith.extui %0 : i1 to i32
    %c0_i32_0 = arith.constant 0 : i32
    %2 = arith.cmpi ne, %1, %c0_i32_0 : i32
    scf.if %2 {
      %cst_10 = arith.constant 0.000000e+00 : f32
      %13 = vector.broadcast %cst_10 : f32 to vector<6x32xf32>
      %c0_11 = arith.constant 0 : index
      %c0_12 = arith.constant 0 : index
      %14 = vector.load %arg7[%c0_11, %c0_12] : memref<6x32xf32, #tpu.memory_space<vmem>>, vector<6x32xf32>
      tpu.vector_store %arg7[%c0_11, %c0_12], %13 {strides = array<i32>} : memref<6x32xf32, #tpu.memory_space<vmem>>, vector<6x32xf32>,
    } else {
    }
    %c0 = arith.constant 0 : index
    %c0_1 = arith.constant 0 : index
    %3 = vector.load %arg7[%c0, %c0_1] : memref<6x32xf32, #tpu.memory_space<vmem>>, vector<6x32xf32>
    %c0_2 = arith.constant 0 : index
    %c0_3 = arith.constant 0 : index
    %4 = vector.load %arg3[%c0_2, %c0_3] : memref<6x96xf32, #tpu.memory_space<vmem>>, vector<6x96xf32>
    %5 = arith.truncf %4 : vector<6x96xf32> to vector<6x96xbf16>
    %c0_4 = arith.constant 0 : index
    %c0_5 = arith.constant 0 : index
    %6 = vector.load %arg4[%c0_4, %c0_5] : memref<96x32xbf16, #tpu.memory_space<vmem>>, vector<96x32xbf16>
    %cst = arith.constant dense<0.000000e+00> : vector<6x32xf32>
    %7 = tpu.matmul %5, %6, %cst {dimension_numbers = #tpu.dot_dimension_numbers<[1], [0], [0], [1], [0, 0, 1, 1], [], []>} : vector<6x96xbf16>, vector<96x32xbf16>, vector<6x32xf32> -> vector<6x32xf32>
    %8 = arith.addf %3, %7 : vector<6x32xf32>
    %c0_6 = arith.constant 0 : index
    %c0_7 = arith.constant 0 : index
    %9 = vector.load %arg7[%c0_6, %c0_7] : memref<6x32xf32, #tpu.memory_space<vmem>>, vector<6x32xf32>
    tpu.vector_store %arg7[%c0_6, %c0_7], %8 {strides = array<i32>} : memref<6x32xf32, #tpu.memory_space<vmem>>, vector<6x32xf32>,
    %c0_i32_8 = arith.constant 0 : i32
    %10 = arith.cmpi eq, %arg2, %c0_i32_8 : i32
    %11 = arith.extui %10 : i1 to i32
    %c0_i32_9 = arith.constant 0 : i32
    %12 = arith.cmpi ne, %11, %c0_i32_9 : i32
    scf.if %12 {
      %c0_10 = arith.constant 0 : index
      %c0_11 = arith.constant 0 : index
      %13 = vector.load %arg7[%c0_10, %c0_11] : memref<6x32xf32, #tpu.memory_space<vmem>>, vector<6x32xf32>
      %c0_12 = arith.constant 0 : index
      %c0_13 = arith.constant 0 : index
      %14 = vector.load %arg5[%c0_12, %c0_13] : memref<1x32xf32, #tpu.memory_space<vmem>>, vector<1x32xf32>
      %15 = vector.broadcast %14 : vector<1x32xf32> to vector<6x32xf32>
      %16 = arith.addf %13, %15 : vector<6x32xf32>
      %c0_14 = arith.constant 0 : index
      %c0_15 = arith.constant 0 : index
      %17 = vector.load %arg6[%c0_14, %c0_15] : memref<6x32xf32, #tpu.memory_space<vmem>>, vector<6x32xf32>
      tpu.vector_store %arg6[%c0_14, %c0_15], %16 {strides = array<i32>} : memref<6x32xf32, #tpu.memory_space<vmem>>, vector<6x32xf32>,
    } else {
    }
    return
  }
  func.func @transform_0(%arg0: i32, %arg1: i32, %arg2: i32) -> (i32, i32) {
    %c0_i32 = arith.constant 0 : i32
    return %arg0, %arg2 : i32, i32
  }
  func.func @transform_1(%arg0: i32, %arg1: i32, %arg2: i32) -> (i32, i32) {
    %c0_i32 = arith.constant 0 : i32
    return %arg2, %arg1 : i32, i32
  }
  func.func @transform_2(%arg0: i32, %arg1: i32, %arg2: i32) -> (i32, i32) {
    %c0_i32 = arith.constant 0 : i32
    %c0_i32_0 = arith.constant 0 : i32
    return %c0_i32, %arg1 : i32, i32
  }
  func.func @transform_3(%arg0: i32, %arg1: i32, %arg2: i32) -> (i32, i32) {
    %c0_i32 = arith.constant 0 : i32
    return %arg0, %arg1 : i32, i32
  }
}

module attributes {stable_mosaic.version = 11 : i64} {
  func.func @_ln_mm_kernel(%arg0: i32, %arg1: i32, %arg2: memref<6x32xf32, #tpu.memory_space<vmem>>, %arg3: memref<1x32xf32, #tpu.memory_space<vmem>>, %arg4: memref<1x32xf32, #tpu.memory_space<vmem>>, %arg5: memref<32x96xbf16, #tpu.memory_space<vmem>>, %arg6: memref<1x96xf32, #tpu.memory_space<vmem>>, %arg7: memref<6x96xf32, #tpu.memory_space<vmem>>) attributes {dimension_semantics = [#tpu.dimension_semantics<parallel>, #tpu.dimension_semantics<parallel>], iteration_bounds = array<i64: 1, 1>, scalar_prefetch = 0 : i64, scratch_operands = 0 : i64, tpu.core_type = #tpu.core_type<tc>, window_params = [{transform_indices = @transform_0, window_bounds = array<i64: 6, 32>}, {pipeline_mode = #tpu.pipeline_mode<synchronous>, transform_indices = @transform_1, window_bounds = array<i64: 1, 32>}, {pipeline_mode = #tpu.pipeline_mode<synchronous>, transform_indices = @transform_2, window_bounds = array<i64: 1, 32>}, {transform_indices = @transform_3, window_bounds = array<i64: 32, 96>}, {transform_indices = @transform_4, window_bounds = array<i64: 1, 96>}, {transform_indices = @transform_5, window_bounds = array<i64: 6, 96>}]} {
    %c0 = arith.constant 0 : index
    %c0_0 = arith.constant 0 : index
    %0 = vector.load %arg2[%c0, %c0_0] : memref<6x32xf32, #tpu.memory_space<vmem>>, vector<6x32xf32>
    %cst = arith.constant dense<0.000000e+00> : vector<6xf32>
    %1 = vector.multi_reduction <add>, %0, %cst [1] : vector<6x32xf32> to vector<6xf32>
    %2 = vector.shape_cast %1 : vector<6xf32> to vector<6x1xf32>
    %cst_1 = arith.constant 3.200000e+01 : f32
    %3 = vector.broadcast %cst_1 : f32 to vector<6x1xf32>
    %4 = arith.divf %2, %3 : vector<6x1xf32>
    %5 = vector.broadcast %4 : vector<6x1xf32> to vector<6x32xf32>
    %6 = arith.subf %0, %5 : vector<6x32xf32>
    %7 = arith.mulf %6, %6 : vector<6x32xf32>
    %cst_2 = arith.constant dense<0.000000e+00> : vector<6xf32>
    %8 = vector.multi_reduction <add>, %7, %cst_2 [1] : vector<6x32xf32> to vector<6xf32>
    %9 = vector.shape_cast %8 : vector<6xf32> to vector<6x1xf32>
    %cst_3 = arith.constant 3.200000e+01 : f32
    %10 = vector.broadcast %cst_3 : f32 to vector<6x1xf32>
    %11 = arith.divf %9, %10 : vector<6x1xf32>
    %12 = vector.broadcast %4 : vector<6x1xf32> to vector<6x32xf32>
    %13 = arith.subf %0, %12 : vector<6x32xf32>
    %cst_4 = arith.constant 9.99999996E-13 : f32
    %14 = vector.broadcast %cst_4 : f32 to vector<6x1xf32>
    %15 = arith.addf %11, %14 : vector<6x1xf32>
    %16 = math.rsqrt %15 : vector<6x1xf32>
    %17 = vector.broadcast %16 : vector<6x1xf32> to vector<6x32xf32>
    %18 = arith.mulf %13, %17 : vector<6x32xf32>
    %c0_5 = arith.constant 0 : index
    %c0_6 = arith.constant 0 : index
    %19 = vector.load %arg3[%c0_5, %c0_6] : memref<1x32xf32, #tpu.memory_space<vmem>>, vector<1x32xf32>
    %20 = vector.broadcast %19 : vector<1x32xf32> to vector<6x32xf32>
    %21 = arith.mulf %18, %20 : vector<6x32xf32>
    %c0_7 = arith.constant 0 : index
    %c0_8 = arith.constant 0 : index
    %22 = vector.load %arg4[%c0_7, %c0_8] : memref<1x32xf32, #tpu.memory_space<vmem>>, vector<1x32xf32>
    %23 = vector.broadcast %22 : vector<1x32xf32> to vector<6x32xf32>
    %24 = arith.addf %21, %23 : vector<6x32xf32>
    %25 = arith.truncf %24 : vector<6x32xf32> to vector<6x32xbf16>
    %c0_9 = arith.constant 0 : index
    %c0_10 = arith.constant 0 : index
    %26 = vector.load %arg5[%c0_9, %c0_10] : memref<32x96xbf16, #tpu.memory_space<vmem>>, vector<32x96xbf16>
    %cst_11 = arith.constant dense<0.000000e+00> : vector<6x96xf32>
    %27 = tpu.matmul %25, %26, %cst_11 {dimension_numbers = #tpu.dot_dimension_numbers<[1], [0], [0], [1], [0, 0, 1, 1], [], []>} : vector<6x32xbf16>, vector<32x96xbf16>, vector<6x96xf32> -> vector<6x96xf32>
    %c0_12 = arith.constant 0 : index
    %c0_13 = arith.constant 0 : index
    %28 = vector.load %arg6[%c0_12, %c0_13] : memref<1x96xf32, #tpu.memory_space<vmem>>, vector<1x96xf32>
    %29 = vector.broadcast %28 : vector<1x96xf32> to vector<6x96xf32>
    %30 = arith.addf %27, %29 : vector<6x96xf32>
    %c0_14 = arith.constant 0 : index
    %c0_15 = arith.constant 0 : index
    %31 = vector.load %arg7[%c0_14, %c0_15] : memref<6x96xf32, #tpu.memory_space<vmem>>, vector<6x96xf32>
    tpu.vector_store %arg7[%c0_14, %c0_15], %30 {strides = array<i32>} : memref<6x96xf32, #tpu.memory_space<vmem>>, vector<6x96xf32>,
    return
  }
  func.func @transform_0(%arg0: i32, %arg1: i32) -> (i32, i32) {
    %c0_i32 = arith.constant 0 : i32
    %c0_i32_0 = arith.constant 0 : i32
    return %arg0, %c0_i32 : i32, i32
  }
  func.func @transform_1(%arg0: i32, %arg1: i32) -> (i32, i32) {
    %c0_i32 = arith.constant 0 : i32
    %c0_i32_0 = arith.constant 0 : i32
    %c0_i32_1 = arith.constant 0 : i32
    return %c0_i32, %c0_i32_0 : i32, i32
  }
  func.func @transform_2(%arg0: i32, %arg1: i32) -> (i32, i32) {
    %c0_i32 = arith.constant 0 : i32
    %c0_i32_0 = arith.constant 0 : i32
    %c0_i32_1 = arith.constant 0 : i32
    return %c0_i32, %c0_i32_0 : i32, i32
  }
  func.func @transform_3(%arg0: i32, %arg1: i32) -> (i32, i32) {
    %c0_i32 = arith.constant 0 : i32
    %c0_i32_0 = arith.constant 0 : i32
    return %c0_i32, %arg1 : i32, i32
  }
  func.func @transform_4(%arg0: i32, %arg1: i32) -> (i32, i32) {
    %c0_i32 = arith.constant 0 : i32
    %c0_i32_0 = arith.constant 0 : i32
    return %c0_i32, %arg1 : i32, i32
  }
  func.func @transform_5(%arg0: i32, %arg1: i32) -> (i32, i32) {
    %c0_i32 = arith.constant 0 : i32
    return %arg0, %arg1 : i32, i32
  }
}

module attributes {stable_mosaic.version = 11 : i64} {
  func.func @_attn_proj_kernel(%arg0: i32, %arg1: memref<1x3x96xf32, #tpu.memory_space<vmem>>, %arg2: memref<1x1x3xf32, #tpu.memory_space<vmem>>, %arg3: memref<1x3x32xf32, #tpu.memory_space<vmem>>, %arg4: memref<32x32xbf16, #tpu.memory_space<vmem>>, %arg5: memref<1x32xf32, #tpu.memory_space<vmem>>, %arg6: memref<1x3x32xf32, #tpu.memory_space<vmem>>) attributes {dimension_semantics = [#tpu.dimension_semantics<parallel>], iteration_bounds = array<i64: 2>, scalar_prefetch = 0 : i64, scratch_operands = 0 : i64, tpu.core_type = #tpu.core_type<tc>, window_params = [{transform_indices = @transform_0, window_bounds = array<i64: 1, 3, 96>}, {transform_indices = @transform_1, window_bounds = array<i64: 1, 1, 3>}, {transform_indices = @transform_2, window_bounds = array<i64: 1, 3, 32>}, {pipeline_mode = #tpu.pipeline_mode<synchronous>, transform_indices = @transform_3, window_bounds = array<i64: 32, 32>}, {pipeline_mode = #tpu.pipeline_mode<synchronous>, transform_indices = @transform_4, window_bounds = array<i64: 1, 32>}, {transform_indices = @transform_5, window_bounds = array<i64: 1, 3, 32>}]} {
    %c0 = arith.constant 0 : index
    %c0_0 = arith.constant 0 : index
    %c0_1 = arith.constant 0 : index
    %0 = vector.load %arg1[%c0, %c0_0, %c0_1] : memref<1x3x96xf32, #tpu.memory_space<vmem>>, vector<1x3x96xf32>
    %1 = vector.shape_cast %0 : vector<1x3x96xf32> to vector<3x96xf32>
    %c0_2 = arith.constant 0 : index
    %c0_3 = arith.constant 0 : index
    %c0_4 = arith.constant 0 : index
    %2 = vector.load %arg2[%c0_2, %c0_3, %c0_4] : memref<1x1x3xf32, #tpu.memory_space<vmem>>, vector<1x1x3xf32>
    %3 = vector.shape_cast %2 : vector<1x1x3xf32> to vector<1x3xf32>
    %cst = arith.constant 5.000000e-01 : f32
    %4 = vector.broadcast %cst : f32 to vector<1x3xf32>
    %5 = arith.cmpf ogt, %3, %4 : vector<1x3xf32>
    %c0_5 = arith.constant 0 : index
    %c0_6 = arith.constant 0 : index
    %6 = vector.load %arg4[%c0_5, %c0_6] : memref<32x32xbf16, #tpu.memory_space<vmem>>, vector<32x32xbf16>
    %c0_7 = arith.constant 0 : index
    %c0_8 = arith.constant 0 : index
    %c0_9 = arith.constant 0 : index
    %7 = vector.load %arg3[%c0_7, %c0_8, %c0_9] : memref<1x3x32xf32, #tpu.memory_space<vmem>>, vector<1x3x32xf32>
    %8 = vector.shape_cast %7 : vector<1x3x32xf32> to vector<3x32xf32>
    %c0_10 = arith.constant 0 : index
    %c0_11 = arith.constant 0 : index
    %9 = vector.load %arg5[%c0_10, %c0_11] : memref<1x32xf32, #tpu.memory_space<vmem>>, vector<1x32xf32>
    %10 = vector.broadcast %9 : vector<1x32xf32> to vector<3x32xf32>
    %11 = arith.addf %8, %10 : vector<3x32xf32>
    %12 = vector.extract_strided_slice %1 {offsets = [0, 0], sizes = [3, 8], strides = [1, 1]} : vector<3x96xf32> to vector<3x8xf32>
    %13 = arith.truncf %12 : vector<3x8xf32> to vector<3x8xbf16>
    %14 = vector.extract_strided_slice %1 {offsets = [0, 32], sizes = [3, 8], strides = [1, 1]} : vector<3x96xf32> to vector<3x8xf32>
    %15 = arith.truncf %14 : vector<3x8xf32> to vector<3x8xbf16>
    %16 = vector.extract_strided_slice %1 {offsets = [0, 64], sizes = [3, 8], strides = [1, 1]} : vector<3x96xf32> to vector<3x8xf32>
    %17 = arith.truncf %16 : vector<3x8xf32> to vector<3x8xbf16>
    %cst_12 = arith.constant dense<0.000000e+00> : vector<3x3xf32>
    %18 = tpu.matmul %13, %15, %cst_12 {dimension_numbers = #tpu.dot_dimension_numbers<[1], [1], [0], [0], [0, 0, 1, 0], [], []>} : vector<3x8xbf16>, vector<3x8xbf16>, vector<3x3xf32> -> vector<3x3xf32>
    %cst_13 = arith.constant 0.353553385 : f32
    %19 = vector.broadcast %cst_13 : f32 to vector<3x3xf32>
    %20 = arith.mulf %18, %19 : vector<3x3xf32>
    %cst_14 = arith.constant -3.40282347E+38 : f32
    %21 = vector.shape_cast %5 : vector<1x3xi1> to vector<1x3xi1>
    %22 = vector.broadcast %21 : vector<1x3xi1> to vector<3x3xi1>
    %23 = vector.broadcast %cst_14 : f32 to vector<3x3xf32>
    %24 = arith.select %22, %20, %23 : vector<3x3xi1>, vector<3x3xf32>
    %cst_15 = arith.constant dense<0xFF800000> : vector<3xf32>
    %25 = vector.multi_reduction <maximumf>, %24, %cst_15 [1] : vector<3x3xf32> to vector<3xf32>
    %26 = vector.shape_cast %25 : vector<3xf32> to vector<3x1xf32>
    %27 = vector.broadcast %26 : vector<3x1xf32> to vector<3x3xf32>
    %28 = arith.subf %24, %27 : vector<3x3xf32>
    %29 = math.exp %28 : vector<3x3xf32>
    %cst_16 = arith.constant dense<0.000000e+00> : vector<3xf32>
    %30 = vector.multi_reduction <add>, %29, %cst_16 [1] : vector<3x3xf32> to vector<3xf32>
    %31 = vector.shape_cast %30 : vector<3xf32> to vector<3x1xf32>
    %32 = tpu.reciprocal %31 {approx = true} : vector<3x1xf32> -> vector<3x1xf32>
    %33 = vector.broadcast %32 : vector<3x1xf32> to vector<3x3xf32>
    %34 = arith.mulf %29, %33 : vector<3x3xf32>
    %cst_17 = arith.constant 0.000000e+00 : f32
    %35 = vector.shape_cast %5 : vector<1x3xi1> to vector<1x3xi1>
    %36 = vector.broadcast %35 : vector<1x3xi1> to vector<3x3xi1>
    %37 = vector.broadcast %cst_17 : f32 to vector<3x3xf32>
    %38 = arith.select %36, %34, %37 : vector<3x3xi1>, vector<3x3xf32>
    %39 = arith.truncf %38 : vector<3x3xf32> to vector<3x3xbf16>
    %cst_18 = arith.constant dense<0.000000e+00> : vector<3x8xf32>
    %40 = tpu.matmul %39, %17, %cst_18 {dimension_numbers = #tpu.dot_dimension_numbers<[1], [0], [0], [1], [0, 0, 1, 1], [], []>} : vector<3x3xbf16>, vector<3x8xbf16>, vector<3x8xf32> -> vector<3x8xf32>
    %41 = arith.truncf %40 : vector<3x8xf32> to vector<3x8xbf16>
    %42 = vector.extract_strided_slice %6 {offsets = [0, 0], sizes = [8, 32], strides = [1, 1]} : vector<32x32xbf16> to vector<8x32xbf16>
    %cst_19 = arith.constant dense<0.000000e+00> : vector<3x32xf32>
    %43 = tpu.matmul %41, %42, %cst_19 {dimension_numbers = #tpu.dot_dimension_numbers<[1], [0], [0], [1], [0, 0, 1, 1], [], []>} : vector<3x8xbf16>, vector<8x32xbf16>, vector<3x32xf32> -> vector<3x32xf32>
    %44 = arith.addf %11, %43 : vector<3x32xf32>
    %45 = vector.extract_strided_slice %1 {offsets = [0, 8], sizes = [3, 8], strides = [1, 1]} : vector<3x96xf32> to vector<3x8xf32>
    %46 = arith.truncf %45 : vector<3x8xf32> to vector<3x8xbf16>
    %47 = vector.extract_strided_slice %1 {offsets = [0, 40], sizes = [3, 8], strides = [1, 1]} : vector<3x96xf32> to vector<3x8xf32>
    %48 = arith.truncf %47 : vector<3x8xf32> to vector<3x8xbf16>
    %49 = vector.extract_strided_slice %1 {offsets = [0, 72], sizes = [3, 8], strides = [1, 1]} : vector<3x96xf32> to vector<3x8xf32>
    %50 = arith.truncf %49 : vector<3x8xf32> to vector<3x8xbf16>
    %cst_20 = arith.constant dense<0.000000e+00> : vector<3x3xf32>
    %51 = tpu.matmul %46, %48, %cst_20 {dimension_numbers = #tpu.dot_dimension_numbers<[1], [1], [0], [0], [0, 0, 1, 0], [], []>} : vector<3x8xbf16>, vector<3x8xbf16>, vector<3x3xf32> -> vector<3x3xf32>
    %cst_21 = arith.constant 0.353553385 : f32
    %52 = vector.broadcast %cst_21 : f32 to vector<3x3xf32>
    %53 = arith.mulf %51, %52 : vector<3x3xf32>
    %cst_22 = arith.constant -3.40282347E+38 : f32
    %54 = vector.shape_cast %5 : vector<1x3xi1> to vector<1x3xi1>
    %55 = vector.broadcast %54 : vector<1x3xi1> to vector<3x3xi1>
    %56 = vector.broadcast %cst_22 : f32 to vector<3x3xf32>
    %57 = arith.select %55, %53, %56 : vector<3x3xi1>, vector<3x3xf32>
    %cst_23 = arith.constant dense<0xFF800000> : vector<3xf32>
    %58 = vector.multi_reduction <maximumf>, %57, %cst_23 [1] : vector<3x3xf32> to vector<3xf32>
    %59 = vector.shape_cast %58 : vector<3xf32> to vector<3x1xf32>
    %60 = vector.broadcast %59 : vector<3x1xf32> to vector<3x3xf32>
    %61 = arith.subf %57, %60 : vector<3x3xf32>
    %62 = math.exp %61 : vector<3x3xf32>
    %cst_24 = arith.constant dense<0.000000e+00> : vector<3xf32>
    %63 = vector.multi_reduction <add>, %62, %cst_24 [1] : vector<3x3xf32> to vector<3xf32>
    %64 = vector.shape_cast %63 : vector<3xf32> to vector<3x1xf32>
    %65 = tpu.reciprocal %64 {approx = true} : vector<3x1xf32> -> vector<3x1xf32>
    %66 = vector.broadcast %65 : vector<3x1xf32> to vector<3x3xf32>
    %67 = arith.mulf %62, %66 : vector<3x3xf32>
    %cst_25 = arith.constant 0.000000e+00 : f32
    %68 = vector.shape_cast %5 : vector<1x3xi1> to vector<1x3xi1>
    %69 = vector.broadcast %68 : vector<1x3xi1> to vector<3x3xi1>
    %70 = vector.broadcast %cst_25 : f32 to vector<3x3xf32>
    %71 = arith.select %69, %67, %70 : vector<3x3xi1>, vector<3x3xf32>
    %72 = arith.truncf %71 : vector<3x3xf32> to vector<3x3xbf16>
    %cst_26 = arith.constant dense<0.000000e+00> : vector<3x8xf32>
    %73 = tpu.matmul %72, %50, %cst_26 {dimension_numbers = #tpu.dot_dimension_numbers<[1], [0], [0], [1], [0, 0, 1, 1], [], []>} : vector<3x3xbf16>, vector<3x8xbf16>, vector<3x8xf32> -> vector<3x8xf32>
    %74 = arith.truncf %73 : vector<3x8xf32> to vector<3x8xbf16>
    %75 = vector.extract_strided_slice %6 {offsets = [8, 0], sizes = [8, 32], strides = [1, 1]} : vector<32x32xbf16> to vector<8x32xbf16>
    %cst_27 = arith.constant dense<0.000000e+00> : vector<3x32xf32>
    %76 = tpu.matmul %74, %75, %cst_27 {dimension_numbers = #tpu.dot_dimension_numbers<[1], [0], [0], [1], [0, 0, 1, 1], [], []>} : vector<3x8xbf16>, vector<8x32xbf16>, vector<3x32xf32> -> vector<3x32xf32>
    %77 = arith.addf %44, %76 : vector<3x32xf32>
    %78 = vector.extract_strided_slice %1 {offsets = [0, 16], sizes = [3, 8], strides = [1, 1]} : vector<3x96xf32> to vector<3x8xf32>
    %79 = arith.truncf %78 : vector<3x8xf32> to vector<3x8xbf16>
    %80 = vector.extract_strided_slice %1 {offsets = [0, 48], sizes = [3, 8], strides = [1, 1]} : vector<3x96xf32> to vector<3x8xf32>
    %81 = arith.truncf %80 : vector<3x8xf32> to vector<3x8xbf16>
    %82 = vector.extract_strided_slice %1 {offsets = [0, 80], sizes = [3, 8], strides = [1, 1]} : vector<3x96xf32> to vector<3x8xf32>
    %83 = arith.truncf %82 : vector<3x8xf32> to vector<3x8xbf16>
    %cst_28 = arith.constant dense<0.000000e+00> : vector<3x3xf32>
    %84 = tpu.matmul %79, %81, %cst_28 {dimension_numbers = #tpu.dot_dimension_numbers<[1], [1], [0], [0], [0, 0, 1, 0], [], []>} : vector<3x8xbf16>, vector<3x8xbf16>, vector<3x3xf32> -> vector<3x3xf32>
    %cst_29 = arith.constant 0.353553385 : f32
    %85 = vector.broadcast %cst_29 : f32 to vector<3x3xf32>
    %86 = arith.mulf %84, %85 : vector<3x3xf32>
    %cst_30 = arith.constant -3.40282347E+38 : f32
    %87 = vector.shape_cast %5 : vector<1x3xi1> to vector<1x3xi1>
    %88 = vector.broadcast %87 : vector<1x3xi1> to vector<3x3xi1>
    %89 = vector.broadcast %cst_30 : f32 to vector<3x3xf32>
    %90 = arith.select %88, %86, %89 : vector<3x3xi1>, vector<3x3xf32>
    %cst_31 = arith.constant dense<0xFF800000> : vector<3xf32>
    %91 = vector.multi_reduction <maximumf>, %90, %cst_31 [1] : vector<3x3xf32> to vector<3xf32>
    %92 = vector.shape_cast %91 : vector<3xf32> to vector<3x1xf32>
    %93 = vector.broadcast %92 : vector<3x1xf32> to vector<3x3xf32>
    %94 = arith.subf %90, %93 : vector<3x3xf32>
    %95 = math.exp %94 : vector<3x3xf32>
    %cst_32 = arith.constant dense<0.000000e+00> : vector<3xf32>
    %96 = vector.multi_reduction <add>, %95, %cst_32 [1] : vector<3x3xf32> to vector<3xf32>
    %97 = vector.shape_cast %96 : vector<3xf32> to vector<3x1xf32>
    %98 = tpu.reciprocal %97 {approx = true} : vector<3x1xf32> -> vector<3x1xf32>
    %99 = vector.broadcast %98 : vector<3x1xf32> to vector<3x3xf32>
    %100 = arith.mulf %95, %99 : vector<3x3xf32>
    %cst_33 = arith.constant 0.000000e+00 : f32
    %101 = vector.shape_cast %5 : vector<1x3xi1> to vector<1x3xi1>
    %102 = vector.broadcast %101 : vector<1x3xi1> to vector<3x3xi1>
    %103 = vector.broadcast %cst_33 : f32 to vector<3x3xf32>
    %104 = arith.select %102, %100, %103 : vector<3x3xi1>, vector<3x3xf32>
    %105 = arith.truncf %104 : vector<3x3xf32> to vector<3x3xbf16>
    %cst_34 = arith.constant dense<0.000000e+00> : vector<3x8xf32>
    %106 = tpu.matmul %105, %83, %cst_34 {dimension_numbers = #tpu.dot_dimension_numbers<[1], [0], [0], [1], [0, 0, 1, 1], [], []>} : vector<3x3xbf16>, vector<3x8xbf16>, vector<3x8xf32> -> vector<3x8xf32>
    %107 = arith.truncf %106 : vector<3x8xf32> to vector<3x8xbf16>
    %108 = vector.extract_strided_slice %6 {offsets = [16, 0], sizes = [8, 32], strides = [1, 1]} : vector<32x32xbf16> to vector<8x32xbf16>
    %cst_35 = arith.constant dense<0.000000e+00> : vector<3x32xf32>
    %109 = tpu.matmul %107, %108, %cst_35 {dimension_numbers = #tpu.dot_dimension_numbers<[1], [0], [0], [1], [0, 0, 1, 1], [], []>} : vector<3x8xbf16>, vector<8x32xbf16>, vector<3x32xf32> -> vector<3x32xf32>
    %110 = arith.addf %77, %109 : vector<3x32xf32>
    %111 = vector.extract_strided_slice %1 {offsets = [0, 24], sizes = [3, 8], strides = [1, 1]} : vector<3x96xf32> to vector<3x8xf32>
    %112 = arith.truncf %111 : vector<3x8xf32> to vector<3x8xbf16>
    %113 = vector.extract_strided_slice %1 {offsets = [0, 56], sizes = [3, 8], strides = [1, 1]} : vector<3x96xf32> to vector<3x8xf32>
    %114 = arith.truncf %113 : vector<3x8xf32> to vector<3x8xbf16>
    %115 = vector.extract_strided_slice %1 {offsets = [0, 88], sizes = [3, 8], strides = [1, 1]} : vector<3x96xf32> to vector<3x8xf32>
    %116 = arith.truncf %115 : vector<3x8xf32> to vector<3x8xbf16>
    %cst_36 = arith.constant dense<0.000000e+00> : vector<3x3xf32>
    %117 = tpu.matmul %112, %114, %cst_36 {dimension_numbers = #tpu.dot_dimension_numbers<[1], [1], [0], [0], [0, 0, 1, 0], [], []>} : vector<3x8xbf16>, vector<3x8xbf16>, vector<3x3xf32> -> vector<3x3xf32>
    %cst_37 = arith.constant 0.353553385 : f32
    %118 = vector.broadcast %cst_37 : f32 to vector<3x3xf32>
    %119 = arith.mulf %117, %118 : vector<3x3xf32>
    %cst_38 = arith.constant -3.40282347E+38 : f32
    %120 = vector.shape_cast %5 : vector<1x3xi1> to vector<1x3xi1>
    %121 = vector.broadcast %120 : vector<1x3xi1> to vector<3x3xi1>
    %122 = vector.broadcast %cst_38 : f32 to vector<3x3xf32>
    %123 = arith.select %121, %119, %122 : vector<3x3xi1>, vector<3x3xf32>
    %cst_39 = arith.constant dense<0xFF800000> : vector<3xf32>
    %124 = vector.multi_reduction <maximumf>, %123, %cst_39 [1] : vector<3x3xf32> to vector<3xf32>
    %125 = vector.shape_cast %124 : vector<3xf32> to vector<3x1xf32>
    %126 = vector.broadcast %125 : vector<3x1xf32> to vector<3x3xf32>
    %127 = arith.subf %123, %126 : vector<3x3xf32>
    %128 = math.exp %127 : vector<3x3xf32>
    %cst_40 = arith.constant dense<0.000000e+00> : vector<3xf32>
    %129 = vector.multi_reduction <add>, %128, %cst_40 [1] : vector<3x3xf32> to vector<3xf32>
    %130 = vector.shape_cast %129 : vector<3xf32> to vector<3x1xf32>
    %131 = tpu.reciprocal %130 {approx = true} : vector<3x1xf32> -> vector<3x1xf32>
    %132 = vector.broadcast %131 : vector<3x1xf32> to vector<3x3xf32>
    %133 = arith.mulf %128, %132 : vector<3x3xf32>
    %cst_41 = arith.constant 0.000000e+00 : f32
    %134 = vector.shape_cast %5 : vector<1x3xi1> to vector<1x3xi1>
    %135 = vector.broadcast %134 : vector<1x3xi1> to vector<3x3xi1>
    %136 = vector.broadcast %cst_41 : f32 to vector<3x3xf32>
    %137 = arith.select %135, %133, %136 : vector<3x3xi1>, vector<3x3xf32>
    %138 = arith.truncf %137 : vector<3x3xf32> to vector<3x3xbf16>
    %cst_42 = arith.constant dense<0.000000e+00> : vector<3x8xf32>
    %139 = tpu.matmul %138, %116, %cst_42 {dimension_numbers = #tpu.dot_dimension_numbers<[1], [0], [0], [1], [0, 0, 1, 1], [], []>} : vector<3x3xbf16>, vector<3x8xbf16>, vector<3x8xf32> -> vector<3x8xf32>
    %140 = arith.truncf %139 : vector<3x8xf32> to vector<3x8xbf16>
    %141 = vector.extract_strided_slice %6 {offsets = [24, 0], sizes = [8, 32], strides = [1, 1]} : vector<32x32xbf16> to vector<8x32xbf16>
    %cst_43 = arith.constant dense<0.000000e+00> : vector<3x32xf32>
    %142 = tpu.matmul %140, %141, %cst_43 {dimension_numbers = #tpu.dot_dimension_numbers<[1], [0], [0], [1], [0, 0, 1, 1], [], []>} : vector<3x8xbf16>, vector<8x32xbf16>, vector<3x32xf32> -> vector<3x32xf32>
    %143 = arith.addf %110, %142 : vector<3x32xf32>
    %c0_44 = arith.constant 0 : index
    %c0_45 = arith.constant 0 : index
    %c0_46 = arith.constant 0 : index
    %144 = vector.load %arg6[%c0_44, %c0_45, %c0_46] : memref<1x3x32xf32, #tpu.memory_space<vmem>>, vector<1x3x32xf32>
    %145 = vector.shape_cast %144 : vector<1x3x32xf32> to vector<3x32xf32>
    %146 = vector.shape_cast %143 : vector<3x32xf32> to vector<1x3x32xf32>
    tpu.vector_store %arg6[%c0_44, %c0_45, %c0_46], %146 {strides = array<i32>} : memref<1x3x32xf32, #tpu.memory_space<vmem>>, vector<1x3x32xf32>,
    return
  }
  func.func @transform_0(%arg0: i32) -> (i32, i32, i32) {
    %c0_i32 = arith.constant 0 : i32
    %c0_i32_0 = arith.constant 0 : i32
    %c0_i32_1 = arith.constant 0 : i32
    return %arg0, %c0_i32, %c0_i32_0 : i32, i32, i32
  }
  func.func @transform_1(%arg0: i32) -> (i32, i32, i32) {
    %c0_i32 = arith.constant 0 : i32
    %c0_i32_0 = arith.constant 0 : i32
    %c0_i32_1 = arith.constant 0 : i32
    return %arg0, %c0_i32, %c0_i32_0 : i32, i32, i32
  }
  func.func @transform_2(%arg0: i32) -> (i32, i32, i32) {
    %c0_i32 = arith.constant 0 : i32
    %c0_i32_0 = arith.constant 0 : i32
    %c0_i32_1 = arith.constant 0 : i32
    return %arg0, %c0_i32, %c0_i32_0 : i32, i32, i32
  }
  func.func @transform_3(%arg0: i32) -> (i32, i32) {
    %c0_i32 = arith.constant 0 : i32
    %c0_i32_0 = arith.constant 0 : i32
    %c0_i32_1 = arith.constant 0 : i32
    return %c0_i32, %c0_i32_0 : i32, i32
  }
  func.func @transform_4(%arg0: i32) -> (i32, i32) {
    %c0_i32 = arith.constant 0 : i32
    %c0_i32_0 = arith.constant 0 : i32
    %c0_i32_1 = arith.constant 0 : i32
    return %c0_i32, %c0_i32_0 : i32, i32
  }
  func.func @transform_5(%arg0: i32) -> (i32, i32, i32) {
    %c0_i32 = arith.constant 0 : i32
    %c0_i32_0 = arith.constant 0 : i32
    %c0_i32_1 = arith.constant 0 : i32
    return %arg0, %c0_i32, %c0_i32_0 : i32, i32, i32
  }
}

module attributes {stable_mosaic.version = 11 : i64} {
  func.func @_ln_kernel(%arg0: i32, %arg1: memref<6x32xf32, #tpu.memory_space<vmem>>, %arg2: memref<1x32xf32, #tpu.memory_space<vmem>>, %arg3: memref<1x32xf32, #tpu.memory_space<vmem>>, %arg4: memref<6x32xf32, #tpu.memory_space<vmem>>) attributes {dimension_semantics = [#tpu.dimension_semantics<parallel>], iteration_bounds = array<i64: 1>, scalar_prefetch = 0 : i64, scratch_operands = 0 : i64, tpu.core_type = #tpu.core_type<tc>, window_params = [{transform_indices = @transform_0, window_bounds = array<i64: 6, 32>}, {pipeline_mode = #tpu.pipeline_mode<synchronous>, transform_indices = @transform_1, window_bounds = array<i64: 1, 32>}, {pipeline_mode = #tpu.pipeline_mode<synchronous>, transform_indices = @transform_2, window_bounds = array<i64: 1, 32>}, {transform_indices = @transform_3, window_bounds = array<i64: 6, 32>}]} {
    %c0 = arith.constant 0 : index
    %c0_0 = arith.constant 0 : index
    %0 = vector.load %arg1[%c0, %c0_0] : memref<6x32xf32, #tpu.memory_space<vmem>>, vector<6x32xf32>
    %cst = arith.constant dense<0.000000e+00> : vector<6xf32>
    %1 = vector.multi_reduction <add>, %0, %cst [1] : vector<6x32xf32> to vector<6xf32>
    %2 = vector.shape_cast %1 : vector<6xf32> to vector<6x1xf32>
    %cst_1 = arith.constant 3.200000e+01 : f32
    %3 = vector.broadcast %cst_1 : f32 to vector<6x1xf32>
    %4 = arith.divf %2, %3 : vector<6x1xf32>
    %5 = vector.broadcast %4 : vector<6x1xf32> to vector<6x32xf32>
    %6 = arith.subf %0, %5 : vector<6x32xf32>
    %7 = arith.mulf %6, %6 : vector<6x32xf32>
    %cst_2 = arith.constant dense<0.000000e+00> : vector<6xf32>
    %8 = vector.multi_reduction <add>, %7, %cst_2 [1] : vector<6x32xf32> to vector<6xf32>
    %9 = vector.shape_cast %8 : vector<6xf32> to vector<6x1xf32>
    %cst_3 = arith.constant 3.200000e+01 : f32
    %10 = vector.broadcast %cst_3 : f32 to vector<6x1xf32>
    %11 = arith.divf %9, %10 : vector<6x1xf32>
    %12 = vector.broadcast %4 : vector<6x1xf32> to vector<6x32xf32>
    %13 = arith.subf %0, %12 : vector<6x32xf32>
    %cst_4 = arith.constant 9.99999996E-13 : f32
    %14 = vector.broadcast %cst_4 : f32 to vector<6x1xf32>
    %15 = arith.addf %11, %14 : vector<6x1xf32>
    %16 = math.rsqrt %15 : vector<6x1xf32>
    %17 = vector.broadcast %16 : vector<6x1xf32> to vector<6x32xf32>
    %18 = arith.mulf %13, %17 : vector<6x32xf32>
    %c0_5 = arith.constant 0 : index
    %c0_6 = arith.constant 0 : index
    %19 = vector.load %arg2[%c0_5, %c0_6] : memref<1x32xf32, #tpu.memory_space<vmem>>, vector<1x32xf32>
    %20 = vector.broadcast %19 : vector<1x32xf32> to vector<6x32xf32>
    %21 = arith.mulf %18, %20 : vector<6x32xf32>
    %c0_7 = arith.constant 0 : index
    %c0_8 = arith.constant 0 : index
    %22 = vector.load %arg3[%c0_7, %c0_8] : memref<1x32xf32, #tpu.memory_space<vmem>>, vector<1x32xf32>
    %23 = vector.broadcast %22 : vector<1x32xf32> to vector<6x32xf32>
    %24 = arith.addf %21, %23 : vector<6x32xf32>
    %c0_9 = arith.constant 0 : index
    %c0_10 = arith.constant 0 : index
    %25 = vector.load %arg4[%c0_9, %c0_10] : memref<6x32xf32, #tpu.memory_space<vmem>>, vector<6x32xf32>
    tpu.vector_store %arg4[%c0_9, %c0_10], %24 {strides = array<i32>} : memref<6x32xf32, #tpu.memory_space<vmem>>, vector<6x32xf32>,
    return
  }
  func.func @transform_0(%arg0: i32) -> (i32, i32) {
    %c0_i32 = arith.constant 0 : i32
    %c0_i32_0 = arith.constant 0 : i32
    return %arg0, %c0_i32 : i32, i32
  }
  func.func @transform_1(%arg0: i32) -> (i32, i32) {
    %c0_i32 = arith.constant 0 : i32
    %c0_i32_0 = arith.constant 0 : i32
    %c0_i32_1 = arith.constant 0 : i32
    return %c0_i32, %c0_i32_0 : i32, i32
  }
  func.func @transform_2(%arg0: i32) -> (i32, i32) {
    %c0_i32 = arith.constant 0 : i32
    %c0_i32_0 = arith.constant 0 : i32
    %c0_i32_1 = arith.constant 0 : i32
    return %c0_i32, %c0_i32_0 : i32, i32
  }
  func.func @transform_3(%arg0: i32) -> (i32, i32) {
    %c0_i32 = arith.constant 0 : i32
    %c0_i32_0 = arith.constant 0 : i32
    return %arg0, %c0_i32 : i32, i32
  }
}

module attributes {stable_mosaic.version = 11 : i64} {
  func.func @_ln_ffn_kernel(%arg0: i32, %arg1: memref<6x32xf32, #tpu.memory_space<vmem>>, %arg2: memref<1x32xf32, #tpu.memory_space<vmem>>, %arg3: memref<1x32xf32, #tpu.memory_space<vmem>>, %arg4: memref<32x64xbf16, #tpu.memory_space<vmem>>, %arg5: memref<1x64xf32, #tpu.memory_space<vmem>>, %arg6: memref<64x32xbf16, #tpu.memory_space<vmem>>, %arg7: memref<1x32xf32, #tpu.memory_space<vmem>>, %arg8: memref<6x32xf32, #tpu.memory_space<vmem>>) attributes {dimension_semantics = [#tpu.dimension_semantics<parallel>], iteration_bounds = array<i64: 1>, scalar_prefetch = 0 : i64, scratch_operands = 0 : i64, tpu.core_type = #tpu.core_type<tc>, window_params = [{transform_indices = @transform_0, window_bounds = array<i64: 6, 32>}, {pipeline_mode = #tpu.pipeline_mode<synchronous>, transform_indices = @transform_1, window_bounds = array<i64: 1, 32>}, {pipeline_mode = #tpu.pipeline_mode<synchronous>, transform_indices = @transform_2, window_bounds = array<i64: 1, 32>}, {pipeline_mode = #tpu.pipeline_mode<synchronous>, transform_indices = @transform_3, window_bounds = array<i64: 32, 64>}, {pipeline_mode = #tpu.pipeline_mode<synchronous>, transform_indices = @transform_4, window_bounds = array<i64: 1, 64>}, {pipeline_mode = #tpu.pipeline_mode<synchronous>, transform_indices = @transform_5, window_bounds = array<i64: 64, 32>}, {pipeline_mode = #tpu.pipeline_mode<synchronous>, transform_indices = @transform_6, window_bounds = array<i64: 1, 32>}, {transform_indices = @transform_7, window_bounds = array<i64: 6, 32>}]} {
    %c0 = arith.constant 0 : index
    %c0_0 = arith.constant 0 : index
    %0 = vector.load %arg1[%c0, %c0_0] : memref<6x32xf32, #tpu.memory_space<vmem>>, vector<6x32xf32>
    %cst = arith.constant dense<0.000000e+00> : vector<6xf32>
    %1 = vector.multi_reduction <add>, %0, %cst [1] : vector<6x32xf32> to vector<6xf32>
    %2 = vector.shape_cast %1 : vector<6xf32> to vector<6x1xf32>
    %cst_1 = arith.constant 3.200000e+01 : f32
    %3 = vector.broadcast %cst_1 : f32 to vector<6x1xf32>
    %4 = arith.divf %2, %3 : vector<6x1xf32>
    %5 = vector.broadcast %4 : vector<6x1xf32> to vector<6x32xf32>
    %6 = arith.subf %0, %5 : vector<6x32xf32>
    %7 = arith.mulf %6, %6 : vector<6x32xf32>
    %cst_2 = arith.constant dense<0.000000e+00> : vector<6xf32>
    %8 = vector.multi_reduction <add>, %7, %cst_2 [1] : vector<6x32xf32> to vector<6xf32>
    %9 = vector.shape_cast %8 : vector<6xf32> to vector<6x1xf32>
    %cst_3 = arith.constant 3.200000e+01 : f32
    %10 = vector.broadcast %cst_3 : f32 to vector<6x1xf32>
    %11 = arith.divf %9, %10 : vector<6x1xf32>
    %12 = vector.broadcast %4 : vector<6x1xf32> to vector<6x32xf32>
    %13 = arith.subf %0, %12 : vector<6x32xf32>
    %cst_4 = arith.constant 9.99999996E-13 : f32
    %14 = vector.broadcast %cst_4 : f32 to vector<6x1xf32>
    %15 = arith.addf %11, %14 : vector<6x1xf32>
    %16 = math.rsqrt %15 : vector<6x1xf32>
    %17 = vector.broadcast %16 : vector<6x1xf32> to vector<6x32xf32>
    %18 = arith.mulf %13, %17 : vector<6x32xf32>
    %c0_5 = arith.constant 0 : index
    %c0_6 = arith.constant 0 : index
    %19 = vector.load %arg2[%c0_5, %c0_6] : memref<1x32xf32, #tpu.memory_space<vmem>>, vector<1x32xf32>
    %20 = vector.broadcast %19 : vector<1x32xf32> to vector<6x32xf32>
    %21 = arith.mulf %18, %20 : vector<6x32xf32>
    %c0_7 = arith.constant 0 : index
    %c0_8 = arith.constant 0 : index
    %22 = vector.load %arg3[%c0_7, %c0_8] : memref<1x32xf32, #tpu.memory_space<vmem>>, vector<1x32xf32>
    %23 = vector.broadcast %22 : vector<1x32xf32> to vector<6x32xf32>
    %24 = arith.addf %21, %23 : vector<6x32xf32>
    %25 = arith.truncf %24 : vector<6x32xf32> to vector<6x32xbf16>
    %c0_9 = arith.constant 0 : index
    %c0_10 = arith.constant 0 : index
    %26 = vector.load %arg4[%c0_9, %c0_10] : memref<32x64xbf16, #tpu.memory_space<vmem>>, vector<32x64xbf16>
    %cst_11 = arith.constant dense<0.000000e+00> : vector<6x64xf32>
    %27 = tpu.matmul %25, %26, %cst_11 {dimension_numbers = #tpu.dot_dimension_numbers<[1], [0], [0], [1], [0, 0, 1, 1], [], []>} : vector<6x32xbf16>, vector<32x64xbf16>, vector<6x64xf32> -> vector<6x64xf32>
    %c0_12 = arith.constant 0 : index
    %c0_13 = arith.constant 0 : index
    %28 = vector.load %arg5[%c0_12, %c0_13] : memref<1x64xf32, #tpu.memory_space<vmem>>, vector<1x64xf32>
    %29 = vector.broadcast %28 : vector<1x64xf32> to vector<6x64xf32>
    %30 = arith.addf %27, %29 : vector<6x64xf32>
    %31 = arith.negf %30 : vector<6x64xf32>
    %32 = math.exp %31 : vector<6x64xf32>
    %cst_14 = arith.constant 1.000000e+00 : f32
    %33 = vector.broadcast %cst_14 : f32 to vector<6x64xf32>
    %34 = arith.addf %33, %32 : vector<6x64xf32>
    %35 = arith.divf %33, %34 : vector<6x64xf32>
    %36 = arith.mulf %30, %35 : vector<6x64xf32>
    %37 = arith.truncf %36 : vector<6x64xf32> to vector<6x64xbf16>
    %c0_15 = arith.constant 0 : index
    %c0_16 = arith.constant 0 : index
    %38 = vector.load %arg6[%c0_15, %c0_16] : memref<64x32xbf16, #tpu.memory_space<vmem>>, vector<64x32xbf16>
    %cst_17 = arith.constant dense<0.000000e+00> : vector<6x32xf32>
    %39 = tpu.matmul %37, %38, %cst_17 {dimension_numbers = #tpu.dot_dimension_numbers<[1], [0], [0], [1], [0, 0, 1, 1], [], []>} : vector<6x64xbf16>, vector<64x32xbf16>, vector<6x32xf32> -> vector<6x32xf32>
    %c0_18 = arith.constant 0 : index
    %c0_19 = arith.constant 0 : index
    %40 = vector.load %arg7[%c0_18, %c0_19] : memref<1x32xf32, #tpu.memory_space<vmem>>, vector<1x32xf32>
    %41 = vector.broadcast %40 : vector<1x32xf32> to vector<6x32xf32>
    %42 = arith.addf %39, %41 : vector<6x32xf32>
    %43 = arith.addf %0, %42 : vector<6x32xf32>
    %c0_20 = arith.constant 0 : index
    %c0_21 = arith.constant 0 : index
    %44 = vector.load %arg8[%c0_20, %c0_21] : memref<6x32xf32, #tpu.memory_space<vmem>>, vector<6x32xf32>
    tpu.vector_store %arg8[%c0_20, %c0_21], %43 {strides = array<i32>} : memref<6x32xf32, #tpu.memory_space<vmem>>, vector<6x32xf32>,
    return
  }
  func.func @transform_0(%arg0: i32) -> (i32, i32) {
    %c0_i32 = arith.constant 0 : i32
    %c0_i32_0 = arith.constant 0 : i32
    return %arg0, %c0_i32 : i32, i32
  }
  func.func @transform_1(%arg0: i32) -> (i32, i32) {
    %c0_i32 = arith.constant 0 : i32
    %c0_i32_0 = arith.constant 0 : i32
    %c0_i32_1 = arith.constant 0 : i32
    return %c0_i32, %c0_i32_0 : i32, i32
  }
  func.func @transform_2(%arg0: i32) -> (i32, i32) {
    %c0_i32 = arith.constant 0 : i32
    %c0_i32_0 = arith.constant 0 : i32
    %c0_i32_1 = arith.constant 0 : i32
    return %c0_i32, %c0_i32_0 : i32, i32
  }
  func.func @transform_3(%arg0: i32) -> (i32, i32) {
    %c0_i32 = arith.constant 0 : i32
    %c0_i32_0 = arith.constant 0 : i32
    %c0_i32_1 = arith.constant 0 : i32
    return %c0_i32, %c0_i32_0 : i32, i32
  }
  func.func @transform_4(%arg0: i32) -> (i32, i32) {
    %c0_i32 = arith.constant 0 : i32
    %c0_i32_0 = arith.constant 0 : i32
    %c0_i32_1 = arith.constant 0 : i32
    return %c0_i32, %c0_i32_0 : i32, i32
  }
  func.func @transform_5(%arg0: i32) -> (i32, i32) {
    %c0_i32 = arith.constant 0 : i32
    %c0_i32_0 = arith.constant 0 : i32
    %c0_i32_1 = arith.constant 0 : i32
    return %c0_i32, %c0_i32_0 : i32, i32
  }
  func.func @transform_6(%arg0: i32) -> (i32, i32) {
    %c0_i32 = arith.constant 0 : i32
    %c0_i32_0 = arith.constant 0 : i32
    %c0_i32_1 = arith.constant 0 : i32
    return %c0_i32, %c0_i32_0 : i32, i32
  }
  func.func @transform_7(%arg0: i32) -> (i32, i32) {
    %c0_i32 = arith.constant 0 : i32
    %c0_i32_0 = arith.constant 0 : i32
    return %arg0, %c0_i32 : i32, i32
  }
}

</mosaic_0001>

<bundles_post_ra>
// kernel: conformer_encoder_forward.10
= control target key start
LH: loop header
LB: loop body
LE: loop exit
PB: predicated region body
PF: predicated region fallthrough
CT: control target
= control target key end

     0   :  { %vm96_vm0 = vcmask 1043456   ;;  %vm97_vm1 = vcmask 1044480   ;;  %v338_v0 = vmov 0.0   ;;  %v339_v2 = vmov 65535   ;;  %s513_s1 = inlined_call_operand.vmem [shape: bf16[9,32], index: 1, kind: input, shape index: {}]   ;;  %s514_s0 = inlined_call_operand.vmem [shape: f32[98,9], index: 0, kind: input, shape index: {}]   ;;  %s515_s2 = inlined_call_operand.vmem [shape: f32[1,32], index: 2, kind: input, shape index: {}]   ;;  %s516_s3 = inlined_call_operand.vmem [shape: f32[98,32], index: 3, kind: output, shape index: {}]  }
   0x1   :  { %302 = vmatprep.subr.bf16.mxu0 %v338_v0  ;;  %v337_v1 = vld [vmem:[%s513_s1] sm:$0x1f]   ;;  %332 = vmatprep.subr.bf16.mxu1 %v338_v0  ;;  %v98_v3 = vsel %vm96_vm0, 4294967295, %v339_v2  ;;  %v48_v5 = vld [vmem:[%s514_s0 + $0x8] sm:$0xff]  ;;  %vm340_vm2 = vmmov 0   ;;  %vm19_vm3 = vcmask 261120  }
   0x2   :  { %v47_v4 = vld [vmem:[%s514_s0] sm:$0xff]  ;;  %v99_v7 = vsel %vm97_vm1, %v98_v3, 0  ;;  %304 = vmatprep.mubr.msk.bf16.mxu0 %vm340_vm2, %v338_v0  ;;  %320 = vmatprep.mubr.msk.bf16.mxu1 %vm340_vm2, %v338_v0  ;;  %v56_v8 = vld [vmem:[%s514_s0 + $0x48] sm:$0xff]  ;;  %20 = vst.msk [vmem:[#allocation2] sm:$0xff] %vm19_vm3, %v338_v0  ;;  %21 = vst.msk [vmem:[#allocation2 + $0x8] sm:$0xff] %vm19_vm3, %v338_v0  ;;  %vm74_vm4 = vcmask 72704  }
   0x3   :  { %v55_v6 = vld [vmem:[%s514_s0 + $0x40] sm:$0xff]  ;;  %v101_v9 = vand.u32 %v337_v1, %v99_v7  ;;  %22 = vst.msk [vmem:[#allocation2 + $0x10] sm:$0xff] %vm19_vm3, %v338_v0  ;;  %23 = vst.msk [vmem:[#allocation2 + $0x18] sm:$0xff] %vm19_vm3, %v338_v0  ;;  %v60_v10 = vpack.c.bf16 %v48_v5, %v47_v4  ;;  %v49_v12 = vld [vmem:[%s514_s0 + $0x10] sm:$0xff]  ;;  %vm32_vm5 = vcmask 254976  }
   0x4   :  { %24 = vst.msk [vmem:[#allocation2 + $0x20] sm:$0xff] %vm19_vm3, %v338_v0  ;;  %25 = vst.msk [vmem:[#allocation2 + $0x28] sm:$0xff] %vm19_vm3, %v338_v0  ;;  %v64_v11 = vpack.c.bf16 %v56_v8, %v55_v6  ;;  %v50_v13 = vld [vmem:[%s514_s0 + $0x18] sm:$0xff]  ;;  %v57_v14 = vld [vmem:[%s514_s0 + $0x50] sm:$0xff] }
   0x5   :  { %26 = vst.msk [vmem:[#allocation2 + $0x30] sm:$0xff] %vm19_vm3, %v338_v0  ;;  %27 = vst.msk [vmem:[#allocation2 + $0x38] sm:$0xff] %vm19_vm3, %v338_v0  ;;  %303 = vmatpush3.bf16.msra.mxu0 %v101_v9  ;;  %333 = vmatpush3.bf16.msra.mxu1 %v101_v9  ;;  %v58_v15 = vld [vmem:[%s514_s0 + $0x58] sm:$0xff]  ;;  %v61_v16 = vpack.c.bf16 %v50_v13, %v49_v12  ;;  %v51_v18 = vld [vmem:[%s514_s0 + $0x20] sm:$0xff] }
   0x6   :  { %28 = vst.msk [vmem:[#allocation2 + $0x40] sm:$0xff] %vm19_vm3, %v338_v0  ;;  %29 = vst.msk [vmem:[#allocation2 + $0x48] sm:$0xff] %vm19_vm3, %v338_v0  ;;  %v65_v17 = vpack.c.bf16 %v58_v15, %v57_v14  ;;  %v52_v19 = vld [vmem:[%s514_s0 + $0x28] sm:$0xff]  ;;  %v59_v20 = vld [vmem:[%s514_s0 + $0x60] sm:$0x3] }
   0x7   :  { %30 = vst.msk [vmem:[#allocation2 + $0x50] sm:$0xff] %vm19_vm3, %v338_v0  ;;  %31 = vst.msk [vmem:[#allocation2 + $0x58] sm:$0xff] %vm19_vm3, %v338_v0  ;;  %v62_v21 = vpack.c.bf16 %v52_v19, %v51_v18  ;;  %v66_v22 = vpack.c.bf16 %v59_v20, %v59_v20  ;;  %v53_v23 = vld [vmem:[%s514_s0 + $0x30] sm:$0xff]  ;;  %v54_v24 = vld [vmem:[%s514_s0 + $0x38] sm:$0xff] }
   0x8   :  { %305 = vmatmul.mubr.msk.bf16.vlgmr.msra.gmra.mrb[0].mxu0 %vm74_vm4, %v60_v10  ;;  %321 = vmatmul.mubr.msk.bf16.vlgmr.msra.gmra.mrb[0].mxu1 %vm74_vm4, %v64_v11  ;;  %v63_v25 = vpack.c.bf16 %v54_v24, %v53_v23  ;;  %33 = vst.msk [vmem:[#allocation2 + $0x60] sm:$0x3] %vm32_vm5, %v338_v0  ;;  %v437_v44 = vld [vmem:[%s515_s2] ss:$0 sm:$0xff] }
   0x9   :  { %308 = vmatprep.mubr.msk.bf16.mxu0 %vm340_vm2, %v338_v0  ;;  %324 = vmatprep.mubr.msk.bf16.mxu1 %vm340_vm2, %v338_v0  ;;  %v34_v26 = vld [vmem:[#allocation2] sm:$0xff]  ;;  %v35_v29 = vld [vmem:[#allocation2 + $0x8] sm:$0xff] }
   0xa   :  { %v36_v42 = vld [vmem:[#allocation2 + $0x10] sm:$0xff]  ;;  %v37_v46 = vld [vmem:[#allocation2 + $0x18] sm:$0xff] }
   0xb   :  { %v38_v5 = vld [vmem:[#allocation2 + $0x20] sm:$0xff]  ;;  %v39_v10 = vld [vmem:[#allocation2 + $0x28] sm:$0xff] }
   0xd   :  { %v42_v27 = vld [vmem:[#allocation2 + $0x40] sm:$0xff]  ;;  %v43_v31 = vld [vmem:[#allocation2 + $0x48] sm:$0xff] }
   0xe   :  { %v44_v43 = vld [vmem:[#allocation2 + $0x50] sm:$0xff]  ;;  %v45_v48 = vld [vmem:[#allocation2 + $0x58] sm:$0xff] }
   0xf   :  { %v46_v6 = vld [vmem:[#allocation2 + $0x60] sm:$0x3] }
  0x10   :  { %309 = vmatmul.mubr.msk.bf16.gmra.mrb[4].mxu0 %vm74_vm4, %v61_v16  ;;  %325 = vmatmul.mubr.msk.bf16.gmra.mrb[4].mxu1 %vm74_vm4, %v65_v17 }
  0x11   :  { %312 = vmatprep.mubr.msk.bf16.mxu0 %vm340_vm2, %v338_v0  ;;  %328 = vmatprep.mubr.msk.bf16.mxu1 %vm340_vm2, %v338_v0 }
  0x18   :  { %313 = vmatmul.mubr.msk.bf16.gmra.mrb[8].mxu0 %vm74_vm4, %v62_v21  ;;  %329 = vmatmul.mubr.msk.bf16.gmra.mrb[8].mxu1 %vm74_vm4, %v66_v22 }
  0x19   :  { %316 = vmatprep.mubr.msk.bf16.mxu0 %vm340_vm2, %v338_v0 }
  0x20   :  { %317 = vmatmul.mubr.msk.bf16.gmra.mrb[12].mxu0 %vm74_vm4, %v63_v25 }
  0xdb   :  { %v137_v28 = vpop.f32.mrb[0].mxu0  ;;  %v169_v30 = vpop.f32.mrb[0].mxu1 }
  0xdc   :  { %v191_v32 = vadd.f32 %v137_v28, %v34_v26  ;;  %v306_v33 = vpop.f32.mrb[1].mxu0  ;;  %v199_v34 = vadd.f32 %v169_v30, %v42_v27  ;;  %v322_v35 = vpop.f32.mrb[1].mxu1 }
  0xdd   :  { %v140_v36 = vpop.f32.mrb[2].mxu0  ;;  %v172_v37 = vpop.f32.mrb[2].mxu1  ;;  %v41_v35 = vld [vmem:[#allocation2 + $0x38] sm:$0xff] }
  0xde   :  { %205 = vst.msk [vmem:[#allocation2] sm:$0xff] %vm19_vm3, %v191_v32  ;;  %v192_v38 = vadd.f32 %v140_v36, %v35_v29  ;;  %v307_v39 = vpop.f32.mrb[3].mxu0  ;;  %213 = vst.msk [vmem:[#allocation2 + $0x40] sm:$0xff] %vm19_vm3, %v199_v34  ;;  %v200_v40 = vadd.f32 %v172_v37, %v43_v31  ;;  %v323_v41 = vpop.f32.mrb[3].mxu1  ;;  %v40_v31 = vld [vmem:[#allocation2 + $0x30] sm:$0xff] }
  0xe0   :  { %206 = vst.msk [vmem:[#allocation2 + $0x8] sm:$0xff] %vm19_vm3, %v192_v38  ;;  %214 = vst.msk [vmem:[#allocation2 + $0x48] sm:$0xff] %vm19_vm3, %v200_v40 }
  0xe3   :  { %v145_v45 = vpop.f32.mrb[4].mxu0  ;;  %v177_v47 = vpop.f32.mrb[4].mxu1 }
  0xe4   :  { %v193_v49 = vadd.f32 %v145_v45, %v36_v42  ;;  %v310_v50 = vpop.f32.mrb[5].mxu0  ;;  %v201_v51 = vadd.f32 %v177_v47, %v44_v43  ;;  %v326_v52 = vpop.f32.mrb[5].mxu1 }
  0xe5   :  { %v222_v53 = vld [vmem:[#allocation2] sm:$0xff]  ;;  %v148_v55 = vpop.f32.mrb[6].mxu0  ;;  %v180_v56 = vpop.f32.mrb[6].mxu1 }
  0xe6   :  { %v230_v54 = vld [vmem:[#allocation2 + $0x40] sm:$0xff]  ;;  %v242_v57 = vadd.f32 %v437_v44, %v222_v53  ;;  %207 = vst.msk [vmem:[#allocation2 + $0x10] sm:$0xff] %vm19_vm3, %v193_v49  ;;  %v194_v59 = vadd.f32 %v148_v55, %v37_v46  ;;  %v311_v60 = vpop.f32.mrb[7].mxu0  ;;  %215 = vst.msk [vmem:[#allocation2 + $0x50] sm:$0xff] %vm19_vm3, %v201_v51  ;;  %v202_v61 = vadd.f32 %v180_v56, %v45_v48  ;;  %v327_v62 = vpop.f32.mrb[7].mxu1 }
  0xe7   :  { %v250_v58 = vadd.f32 %v437_v44, %v230_v54  ;;  %v223_v63 = vld [vmem:[#allocation2 + $0x8] sm:$0xff] }
  0xe8   :  { %v231_v0 = vld [vmem:[#allocation2 + $0x48] sm:$0xff]  ;;  %v255_v1 = vmax.f32 %v242_v57, 0.0  ;;  %v243_v2 = vadd.f32 %v437_v44, %v223_v63  ;;  %208 = vst.msk [vmem:[#allocation2 + $0x18] sm:$0xff] %vm19_vm3, %v194_v59  ;;  %216 = vst.msk [vmem:[#allocation2 + $0x58] sm:$0xff] %vm19_vm3, %v202_v61 }
  0xe9   :  { %v263_v3 = vmax.f32 %v250_v58, 0.0  ;;  %v251_v4 = vadd.f32 %v437_v44, %v231_v0 }
  0xea   :  { %268 = vst.msk [vmem:[%s516_s3] sm:$0xff] %vm19_vm3, %v255_v1  ;;  %v256_v7 = vmax.f32 %v243_v2, 0.0 }
  0xeb   :  { %276 = vst.msk [vmem:[%s516_s3 + $0x40] sm:$0xff] %vm19_vm3, %v263_v3  ;;  %v264_v8 = vmax.f32 %v251_v4, 0.0  ;;  %v153_v9 = vpop.f32.mrb[8].mxu0  ;;  %v185_v11 = vpop.f32.mrb[8].mxu1 }
  0xec   :  { %269 = vst.msk [vmem:[%s516_s3 + $0x8] sm:$0xff] %vm19_vm3, %v256_v7  ;;  %v195_v12 = vadd.f32 %v153_v9, %v38_v5  ;;  %v314_v13 = vpop.f32.mrb[9].mxu0  ;;  %v203_v14 = vadd.f32 %v185_v11, %v46_v6  ;;  %v330_v15 = vpop.f32.mrb[9].mxu1 }
  0xed   :  { %277 = vst.msk [vmem:[%s516_s3 + $0x48] sm:$0xff] %vm19_vm3, %v264_v8  ;;  %v224_v16 = vld [vmem:[#allocation2 + $0x10] sm:$0xff]  ;;  %v156_v18 = vpop.f32.mrb[10].mxu0  ;;  %v188_v19 = vpop.f32.mrb[10].mxu1 }
  0xee   :  { %v232_v17 = vld [vmem:[#allocation2 + $0x50] sm:$0xff]  ;;  %v244_v20 = vadd.f32 %v437_v44, %v224_v16  ;;  %209 = vst.msk [vmem:[#allocation2 + $0x20] sm:$0xff] %vm19_vm3, %v195_v12  ;;  %v196_v22 = vadd.f32 %v156_v18, %v39_v10  ;;  %v315_v23 = vpop.f32.mrb[11].mxu0  ;;  %v331_v24 = vpop.f32.mrb[11].mxu1 }
  0xef   :  { %v252_v21 = vadd.f32 %v437_v44, %v232_v17  ;;  %218 = vst.msk [vmem:[#allocation2 + $0x60] sm:$0x3] %vm32_vm5, %v203_v14  ;;  %v225_v25 = vld [vmem:[#allocation2 + $0x18] sm:$0xff] }
  0xf0   :  { %v233_v26 = vld [vmem:[#allocation2 + $0x58] sm:$0xff]  ;;  %v257_v27 = vmax.f32 %v244_v20, 0.0  ;;  %v245_v28 = vadd.f32 %v437_v44, %v225_v25  ;;  %210 = vst.msk [vmem:[#allocation2 + $0x28] sm:$0xff] %vm19_vm3, %v196_v22 }
  0xf1   :  { %v265_v29 = vmax.f32 %v252_v21, 0.0  ;;  %v253_v30 = vadd.f32 %v437_v44, %v233_v26 }
  0xf2   :  { %270 = vst.msk [vmem:[%s516_s3 + $0x10] sm:$0xff] %vm19_vm3, %v257_v27  ;;  %v258_v32 = vmax.f32 %v245_v28, 0.0 }
  0xf3   :  { %278 = vst.msk [vmem:[%s516_s3 + $0x50] sm:$0xff] %vm19_vm3, %v265_v29  ;;  %v266_v33 = vmax.f32 %v253_v30, 0.0  ;;  %v161_v34 = vpop.f32.mrb[12].mxu0 }
  0xf4   :  { %271 = vst.msk [vmem:[%s516_s3 + $0x18] sm:$0xff] %vm19_vm3, %v258_v32  ;;  %v197_v36 = vadd.f32 %v161_v34, %v40_v31  ;;  %v318_v37 = vpop.f32.mrb[13].mxu0 }
  0xf5   :  { %279 = vst.msk [vmem:[%s516_s3 + $0x58] sm:$0xff] %vm19_vm3, %v266_v33  ;;  %v226_v38 = vld [vmem:[#allocation2 + $0x20] sm:$0xff]  ;;  %v164_v40 = vpop.f32.mrb[14].mxu0 }
  0xf6   :  { %v234_v39 = vld [vmem:[#allocation2 + $0x60] sm:$0x3]  ;;  %v246_v41 = vadd.f32 %v437_v44, %v226_v38  ;;  %211 = vst.msk [vmem:[#allocation2 + $0x30] sm:$0xff] %vm19_vm3, %v197_v36  ;;  %v198_v43 = vadd.f32 %v164_v40, %v41_v35  ;;  %v319_v45 = vpop.f32.mrb[15].mxu0 }
  0xf7   :  { %v254_v42 = vadd.f32 %v437_v44, %v234_v39  ;;  %v227_v46 = vld [vmem:[#allocation2 + $0x28] sm:$0xff] }
  0xf8   :  { %v259_v47 = vmax.f32 %v246_v41, 0.0  ;;  %v247_v48 = vadd.f32 %v437_v44, %v227_v46  ;;  %212 = vst.msk [vmem:[#allocation2 + $0x38] sm:$0xff] %vm19_vm3, %v198_v43 }
  0xf9   :  { %v267_v49 = vmax.f32 %v254_v42, 0.0 }
  0xfa   :  { %272 = vst.msk [vmem:[%s516_s3 + $0x20] sm:$0xff] %vm19_vm3, %v259_v47  ;;  %v260_v50 = vmax.f32 %v247_v48, 0.0 }
  0xfb   :  { %280 = vst.msk [vmem:[%s516_s3 + $0x60] sm:$0x3] %vm32_vm5, %v267_v49 }
  0xfc   :  { %273 = vst.msk [vmem:[%s516_s3 + $0x28] sm:$0xff] %vm19_vm3, %v260_v50 }
  0xfd   :  { %v228_v51 = vld [vmem:[#allocation2 + $0x30] sm:$0xff] }
  0xfe   :  { %v248_v52 = vadd.f32 %v437_v44, %v228_v51 }
  0xff   :  { %v229_v53 = vld [vmem:[#allocation2 + $0x38] sm:$0xff] }
 0x100   :  { %v261_v54 = vmax.f32 %v248_v52, 0.0  ;;  %v249_v55 = vadd.f32 %v437_v44, %v229_v53 }
 0x102   :  { %274 = vst.msk [vmem:[%s516_s3 + $0x30] sm:$0xff] %vm19_vm3, %v261_v54  ;;  %v262_v56 = vmax.f32 %v249_v55, 0.0 }
 0x104   :  { %275 = vst.msk [vmem:[%s516_s3 + $0x38] sm:$0xff] %vm19_vm3, %v262_v56 }

// kernel: conformer_encoder_forward.11
= control target key start
LH: loop header
LB: loop body
LE: loop exit
PB: predicated region body
PF: predicated region fallthrough
CT: control target
= control target key end

     0   :  { %vm19_vm0 = vcmask 261120   ;;  %v402_v33 = vmov 0.0   ;;  %vm22_vm1 = vcmask 254976   ;;  %s527_s1 = inlined_call_operand.vmem [shape: bf16[288,32], index: 1, kind: input, shape index: {}]   ;;  %s528_s0 = inlined_call_operand.vmem [shape: f32[18,288], index: 0, kind: input, shape index: {}]   ;;  %s529_s2 = inlined_call_operand.vmem [shape: f32[1,32], index: 2, kind: input, shape index: {}]   ;;  %s530_s3 = inlined_call_operand.vmem [shape: f32[18,32], index: 3, kind: output, shape index: {}]  }
   0x1   :  { %v384_v0 = vld [vmem:[%s527_s1 + $0x40] sm:$0xff]   ;;  %v386_v2 = vld [vmem:[%s527_s1 + $0x48] sm:$0xff]   ;;  %v388_v4 = vld [vmem:[%s527_s1 + $0x50] sm:$0xff]   ;;  %20 = vst.msk [vmem:[#allocation2] sm:$0xff] %vm19_vm0, %v402_v33 }
   0x2   :  { %v385_v1 = vld [vmem:[%s527_s1] sm:$0xff]   ;;  %343 = vmatprep.subr.bf16.mxu0 %v384_v0  ;;  %v387_v3 = vld [vmem:[%s527_s1 + $0x8] sm:$0xff]   ;;  %v389_v5 = vld [vmem:[%s527_s1 + $0x10] sm:$0xff]   ;;  %21 = vst.msk [vmem:[#allocation2 + $0x8] sm:$0xff] %vm19_vm0, %v402_v33 }
   0x3   :  { %344 = vmatpush3.bf16.msra.mxu0 %v385_v1  ;;  %v390_v6 = vld [vmem:[%s527_s1 + $0x58] sm:$0xff]   ;;  %v392_v8 = vld [vmem:[%s527_s1 + $0x60] sm:$0xff]   ;;  %v394_v11 = vld [vmem:[%s527_s1 + $0x68] sm:$0xff]   ;;  %23 = vst.msk [vmem:[#allocation2 + $0x10] sm:$0x3] %vm22_vm1, %v402_v33 }
   0x4   :  { %345 = vmatprep.subr.bf16.mxu0 %v386_v2  ;;  %v391_v7 = vld [vmem:[%s527_s1 + $0x18] sm:$0xff]   ;;  %v398_v9 = vld [vmem:[%s527_s1 + $0x80] sm:$0xff]   ;;  %v401_v12 = vld [vmem:[%s527_s1 + $0x88] sm:$0xff]  }
   0x5   :  { %v393_v10 = vld [vmem:[%s527_s1 + $0x20] sm:$0xff]   ;;  %375 = vmatprep.subr.bf16.mxu1 %v398_v9  ;;  %v28_v13 = vld [vmem:[%s528_s0 + $0x8] sm:$0xff]  ;;  %v29_v17 = vld [vmem:[%s528_s0 + $0x10] sm:$0xff] }
   0x6   :  { %376 = vmatpush3.bf16.msra.mxu1 %v398_v9  ;;  %v31_v14 = vld [vmem:[%s528_s0 + $0x20] sm:$0xff]  ;;  %v395_v15 = vld [vmem:[%s527_s1 + $0x28] sm:$0xff]   ;;  %v396_v19 = vld [vmem:[%s527_s1 + $0x70] sm:$0xff]  }
   0x7   :  { %346 = vmatpush3.bf16.msra.mxu0 %v387_v3  ;;  %377 = vmatprep.subr.bf16.mxu1 %v401_v12  ;;  %v37_v16 = vpack.c.bf16 %v31_v14, %v28_v13  ;;  %v32_v18 = vld [vmem:[%s528_s0 + $0x28] sm:$0xff]  ;;  %v35_v21 = vld [vmem:[%s528_s0 + $0x40] sm:$0x3]  ;;  %v397_v23 = vld [vmem:[%s527_s1 + $0x30] sm:$0xff]  }
   0x8   :  { %347 = vmatprep.subr.bf16.mxu0 %v388_v4  ;;  %v38_v20 = vpack.c.bf16 %v32_v18, %v29_v17  ;;  %v41_v22 = vpack.c.bf16 %v35_v21, %v35_v21  ;;  %v399_v24 = vld [vmem:[%s527_s1 + $0x78] sm:$0xff]   ;;  %v27_v26 = vld [vmem:[%s528_s0] sm:$0xff]  ;;  %v33_v31 = vld [vmem:[%s528_s0 + $0x30] sm:$0x3] }
   0x9   :  { %225 = vmatprep.mubr.bf16.mxu0 %v37_v16  ;;  %v400_v25 = vld [vmem:[%s527_s1 + $0x38] sm:$0xff]   ;;  %v39_v32 = vpack.c.bf16 %v33_v31, %v33_v31  ;;  %v24_v43 = vld [vmem:[#allocation2] sm:$0xff]  ;;  %v25_v46 = vld [vmem:[#allocation2 + $0x8] sm:$0xff] }
   0xa   :  { %378 = vmatpush3.bf16.msra.mxu1 %v401_v12  ;;  %379 = vmatprep.mubr.msk.bf16.mxu1 %vm19_vm0, %v38_v20  ;;  %v30_v27 = vld [vmem:[%s528_s0 + $0x18] sm:$0xff]  ;;  %v26_v54 = vld [vmem:[#allocation2 + $0x10] sm:$0x3]  ;;  %v342_v57 = vld [vmem:[%s529_s2] ss:$0 sm:$0xff] }
   0xb   :  { %348 = vmatpush3.bf16.msra.mxu0 %v389_v5  ;;  %v34_v28 = vld [vmem:[%s528_s0 + $0x38] sm:$0x3]  ;;  %v36_v29 = vpack.c.bf16 %v30_v27, %v27_v26 }
   0xc   :  { %349 = vmatprep.subr.bf16.mxu0 %v390_v6  ;;  %v40_v30 = vpack.c.bf16 %v34_v28, %v34_v28 }
   0xd   :  { %380 = vmatmul.mubr.msk.bf16.vlgmr.msra.gmra.mrb[0].mxu1 %vm19_vm0, %v41_v22 }
   0xf   :  { %350 = vmatpush3.bf16.msra.mxu0 %v391_v7 }
  0x10   :  { %351 = vmatprep.subr.bf16.mxu0 %v392_v8 }
  0x13   :  { %352 = vmatpush3.bf16.msra.mxu0 %v393_v10 }
  0x14   :  { %353 = vmatprep.subr.bf16.mxu0 %v394_v11 }
  0x17   :  { %354 = vmatpush3.bf16.msra.mxu0 %v395_v15 }
  0x18   :  { %355 = vmatprep.subr.bf16.mxu0 %v396_v19 }
  0x1b   :  { %356 = vmatpush3.bf16.msra.mxu0 %v397_v23 }
  0x1c   :  { %357 = vmatprep.subr.bf16.mxu0 %v399_v24 }
  0x1f   :  { %358 = vmatpush3.bf16.msra.mxu0 %v400_v25 }
  0x22   :  { %226 = vmatmul.mubr.bf16.vlgmr.msra.gmra.mrb[0].mxu0 %v36_v29 }
  0x23   :  { %233 = vmatprep.mubr.bf16.mxu0 %v40_v30 }
  0x2a   :  { %234 = vmatmul.mubr.bf16.gmra.mrb[4].mxu0 %v39_v32 }
  0xe0   :  { %v381_v34 = vpop.f32.mrb[0].mxu1 }
  0xe1   :  { %v275_v35 = vpop.f32.mrb[1].mxu1 }
  0xe2   :  { %v382_v36 = vpop.f32.mrb[2].mxu1 }
  0xe3   :  { %v278_v37 = vpop.f32.mrb[3].mxu1 }
  0xf5   :  { %v359_v38 = vpop.f32.mrb[0].mxu0 }
  0xf6   :  { %v360_v39 = vpop.f32.mrb[1].mxu0 }
  0xf7   :  { %v361_v40 = vadd.f32 %v360_v39, %v359_v38  ;;  %v362_v41 = vpop.f32.mrb[2].mxu0 }
  0xf8   :  { %v363_v42 = vpop.f32.mrb[3].mxu0 }
  0xf9   :  { %v364_v44 = vadd.f32 %v363_v42, %v362_v41  ;;  %v276_v45 = vadd.f32 %v361_v40, %v275_v35 }
  0xfb   :  { %v289_v47 = vadd.f32 %v276_v45, %v24_v43  ;;  %v279_v48 = vadd.f32 %v364_v44, %v278_v37 }
  0xfd   :  { %292 = vst.msk [vmem:[#allocation2] sm:$0xff] %vm19_vm0, %v289_v47  ;;  %v290_v49 = vadd.f32 %v279_v48, %v25_v46  ;;  %v365_v50 = vpop.f32.mrb[4].mxu0 }
  0xfe   :  { %v366_v51 = vpop.f32.mrb[5].mxu0 }
  0xff   :  { %293 = vst.msk [vmem:[#allocation2 + $0x8] sm:$0xff] %vm19_vm0, %v290_v49  ;;  %v367_v52 = vadd.f32 %v366_v51, %v365_v50  ;;  %v368_v53 = vpop.f32.mrb[6].mxu0 }
 0x100   :  { %v369_v55 = vpop.f32.mrb[7].mxu0 }
 0x101   :  { %v284_v56 = vadd.f32 %v381_v34, %v367_v52 }
 0x103   :  { %v291_v58 = vadd.f32 %v284_v56, %v26_v54 }
 0x104   :  { %v299_v59 = vld [vmem:[#allocation2] sm:$0xff] }
 0x105   :  { %295 = vst.msk [vmem:[#allocation2 + $0x10] sm:$0x3] %vm22_vm1, %v291_v58  ;;  %v309_v60 = vadd.f32 %v342_v57, %v299_v59 }
 0x106   :  { %v300_v61 = vld [vmem:[#allocation2 + $0x8] sm:$0xff] }
 0x107   :  { %v310_v62 = vadd.f32 %v342_v57, %v300_v61  ;;  %v312_v63 = vmax.f32 %v309_v60, 0.0 }
 0x109   :  { %v313_v0 = vmax.f32 %v310_v62, 0.0  ;;  %315 = vst.msk [vmem:[%s530_s3] sm:$0xff] %vm19_vm0, %v312_v63 }
 0x10b   :  { %316 = vst.msk [vmem:[%s530_s3 + $0x8] sm:$0xff] %vm19_vm0, %v313_v0 }
 0x10c   :  { %v301_v1 = vld [vmem:[#allocation2 + $0x10] sm:$0x3] }
 0x10d   :  { %v311_v2 = vadd.f32 %v342_v57, %v301_v1 }
 0x10f   :  { %v314_v3 = vmax.f32 %v311_v2, 0.0 }
 0x111   :  { %317 = vst.msk [vmem:[%s530_s3 + $0x10] sm:$0x3] %vm22_vm1, %v314_v3 }

// kernel: conformer_encoder_forward.12
= control target key start
LH: loop header
LB: loop body
LE: loop exit
PB: predicated region body
PF: predicated region fallthrough
CT: control target
= control target key end

     0   :  { %vm19_vm0 = vcmask 259072   ;;  %v175_v0 = vmov 0.0   ;;  %vm176_vm1 = vmmov 0   ;;  %vm72_vm2 = vcmask 785408   ;;  %s227_s1 = inlined_call_operand.vmem [shape: bf16[96,32], index: 1, kind: input, shape index: {}]   ;;  %s228_s0 = inlined_call_operand.vmem [shape: f32[6,96], index: 0, kind: input, shape index: {}]   ;;  %s229_s2 = inlined_call_operand.vmem [shape: f32[1,32], index: 2, kind: input, shape index: {}]   ;;  %s230_s3 = inlined_call_operand.vmem [shape: f32[6,32], index: 3, kind: output, shape index: {}]  }
   0x1   :  { %151 = vmatprep.subr.bf16.mxu0 %v175_v0  ;;  %v169_v1 = vld [vmem:[%s227_s1] sm:$0xff]   ;;  %163 = vmatprep.mubr.msk.bf16.mxu0 %vm176_vm1, %v175_v0  ;;  %20 = vst.msk [vmem:[#allocation2] sm:$0x3f] %vm19_vm0, %v175_v0  ;;  %v170_v2 = vld [vmem:[%s227_s1 + $0x8] sm:$0xff]   ;;  %v171_v3 = vld [vmem:[%s227_s1 + $0x10] sm:$0xff]  }
   0x2   :  { %152 = vmatpush3.bf16.msra.mxu0 %v169_v1  ;;  %v172_v4 = vld [vmem:[%s227_s1 + $0x18] sm:$0xff]   ;;  %v173_v5 = vld [vmem:[%s227_s1 + $0x20] sm:$0xff]   ;;  %v174_v6 = vld [vmem:[%s227_s1 + $0x28] sm:$0xff]  }
   0x3   :  { %153 = vmatprep.subr.bf16.mxu0 %v175_v0  ;;  %v22_v7 = vld [vmem:[%s228_s0] sm:$0x3f] }
   0x4   :  { %v23_v8 = vpack.c.bf16 %v22_v7, %v22_v7  ;;  %v143_v15 = vld [vmem:[%s229_s2] ss:$0 sm:$0xff] }
   0x6   :  { %154 = vmatpush3.bf16.msra.mxu0 %v170_v2 }
   0x7   :  { %155 = vmatprep.subr.bf16.mxu0 %v175_v0 }
   0x8   :  { %v21_v9 = vld [vmem:[#allocation2] sm:$0x3f] }
   0xa   :  { %156 = vmatpush3.bf16.msra.mxu0 %v171_v3 }
   0xb   :  { %157 = vmatprep.subr.bf16.mxu0 %v175_v0 }
   0xe   :  { %158 = vmatpush3.bf16.msra.mxu0 %v172_v4 }
   0xf   :  { %159 = vmatprep.subr.bf16.mxu0 %v175_v0 }
  0x12   :  { %160 = vmatpush3.bf16.msra.mxu0 %v173_v5 }
  0x13   :  { %161 = vmatprep.subr.bf16.mxu0 %v175_v0 }
  0x16   :  { %162 = vmatpush3.bf16.msra.mxu0 %v174_v6 }
  0x19   :  { %164 = vmatmul.mubr.msk.bf16.vlgmr.msra.gmra.mrb[0].mxu0 %vm72_vm2, %v23_v8 }
  0xec   :  { %v110_v10 = vpop.f32.mrb[0].mxu0 }
  0xed   :  { %v116_v11 = vadd.f32 %v110_v10, %v21_v9  ;;  %v165_v12 = vpop.f32.mrb[1].mxu0 }
  0xee   :  { %v113_v13 = vpop.f32.mrb[2].mxu0 }
  0xef   :  { %118 = vst.msk [vmem:[#allocation2] sm:$0x3f] %vm19_vm0, %v116_v11  ;;  %v166_v14 = vpop.f32.mrb[3].mxu0 }
  0xf6   :  { %v122_v16 = vld [vmem:[#allocation2] sm:$0x3f] }
  0xf7   :  { %v130_v17 = vadd.f32 %v143_v15, %v122_v16 }
  0xf9   :  { %131 = vst.msk [vmem:[%s230_s3] sm:$0x3f] %vm19_vm0, %v130_v17 }

// kernel: conformer_encoder_forward.13
= control target key start
LH: loop header
LB: loop body
LE: loop exit
PB: predicated region body
PF: predicated region fallthrough
CT: control target
= control target key end

     0   :  { %vm22_vm0 = vcmask 259072   ;;  %v150_v8 = vmov 0.0   ;;  %vm151_vm1 = vmmov 0   ;;  %vm77_vm2 = vcmask 261120   ;;  %s203_s0 = inlined_call_operand.vmem [shape: f32[6,32], index: 0, kind: input, shape index: {}]   ;;  %s204_s3 = inlined_call_operand.vmem [shape: bf16[32,96], index: 3, kind: input, shape index: {}]   ;;  %s205_s1 = inlined_call_operand.vmem [shape: f32[1,32], index: 1, kind: input, shape index: {}]   ;;  %s206_s2 = inlined_call_operand.vmem [shape: f32[1,32], index: 2, kind: input, shape index: {}]   ;;  %s207_s4 = inlined_call_operand.vmem [shape: f32[1,96], index: 4, kind: input, shape index: {}]   ;;  %s208_s5 = inlined_call_operand.vmem [shape: f32[6,96], index: 5, kind: output, shape index: {}]  }
   0x1   :  { %v21_v0 = vld [vmem:[%s203_s0] sm:$0x3f]  ;;  %136 = vmatprep.subr.bf16.mxu0 %v150_v8  ;;  %v147_v9 = vld [vmem:[%s204_s3 + $0x8] sm:$0xff]   ;;  %140 = vmatprep.mubr.msk.bf16.mxu0 %vm151_vm1, %v150_v8  ;;  %vm121_vm3 = vcmask 783360  }
   0x2   :  { %v23_v1 = vsel %vm22_vm0, %v21_v0, 0.0  ;;  %v146_v7 = vld [vmem:[%s204_s3] sm:$0xff]  }
   0x3   :  { %24 = vadd.xlane.f32.xlu0 %v23_v1  ;;  %137 = vmatpush3.bf16.msra.mxu0 %v146_v7  ;;  %v127_v14 = vld [vmem:[%s205_s1] ss:$0 sm:$0xff] }
   0x4   :  { %138 = vmatprep.subr.bf16.mxu0 %v150_v8  ;;  %v128_v16 = vld [vmem:[%s206_s2] ss:$0 sm:$0xff] }
   0x5   :  { %v129_v20 = vld [vmem:[%s207_s4] ss:$0 sm:$0xff] }
   0x7   :  { %139 = vmatpush3.bf16.msra.mxu0 %v147_v9 }
  0x90   :  { %v25_v2 = vpop.xlane.xlu0 %24 }
  0x91   :  { %v27_v3 = vmul.f32 0.03125, %v25_v2 }
  0x93   :  { %v28_v4 = vsub.f32 %v21_v0, %v27_v3 }
  0x95   :  { %v29_v5 = vmul.f32 %v28_v4, %v28_v4 }
  0x97   :  { %v30_v6 = vsel %vm22_vm0, %v29_v5, 0.0 }
  0x98   :  { %31 = vadd.xlane.f32.xlu0 %v30_v6 }
 0x125   :  { %v32_v10 = vpop.xlane.xlu0 %31 }
 0x126   :  { %v33_v11 = vmul.f32 0.03125, %v32_v10 }
 0x128   :  { %v34_v12 = vadd.f32 1e-12, %v33_v11 }
 0x12a   :  { %148 = vrsqrt.f32 %v34_v12 }
 0x134   :  { %v149_v13 = vpop.eup %148 }
 0x135   :  { %v36_v15 = vmul.f32 %v149_v13, %v28_v4 }
 0x137   :  { %v44_v17 = vmul.f32 %v127_v14, %v36_v15 }
 0x139   :  { %v52_v18 = vadd.f32 %v128_v16, %v44_v17 }
 0x13b   :  { %v53_v19 = vpack.c.bf16 %v52_v18, %v52_v18 }
 0x13d   :  { %141 = vmatmul.mubr.msk.bf16.vlgmr.msra.gmra.mrb[0].mxu0 %vm77_vm2, %v53_v19 }
 0x210   :  { %v115_v21 = vpop.f32.mrb[0].mxu0 }
 0x211   :  { %v116_v22 = vadd.f32 %v129_v20, %v115_v21  ;;  %v142_v23 = vpop.f32.mrb[1].mxu0 }
 0x212   :  { %v118_v24 = vpop.f32.mrb[2].mxu0 }
 0x213   :  { %122 = vst.msk [vmem:[%s208_s5] sm:$0x3f] %vm121_vm3, %v116_v22  ;;  %v143_v25 = vpop.f32.mrb[3].mxu0 }

// kernel: conformer_encoder_forward.19
= control target key start
LH: loop header
LB: loop body
LE: loop exit
PB: predicated region body
PF: predicated region fallthrough
CT: control target
= control target key end

     0   :  { %vm15_vm0 = vcmask 259072   ;;  %s90_s0 = inlined_call_operand.vmem [shape: f32[6,32], index: 0, kind: input, shape index: {}]   ;;  %s91_s1 = inlined_call_operand.vmem [shape: f32[1,32], index: 1, kind: input, shape index: {}]   ;;  %s92_s2 = inlined_call_operand.vmem [shape: f32[1,32], index: 2, kind: input, shape index: {}]   ;;  %s93_s3 = inlined_call_operand.vmem [shape: f32[6,32], index: 3, kind: output, shape index: {}]  }
   0x1   :  { %v14_v0 = vld [vmem:[%s90_s0] sm:$0x3f] }
   0x2   :  { %v16_v1 = vsel %vm15_vm0, %v14_v0, 0.0  ;;  %v51_v11 = vld [vmem:[%s91_s1] ss:$0 sm:$0xff] }
   0x3   :  { %17 = vadd.xlane.f32.xlu0 %v16_v1  ;;  %v52_v13 = vld [vmem:[%s92_s2] ss:$0 sm:$0xff] }
  0x90   :  { %v18_v2 = vpop.xlane.xlu0 %17 }
  0x91   :  { %v20_v3 = vmul.f32 0.03125, %v18_v2 }
  0x93   :  { %v21_v4 = vsub.f32 %v14_v0, %v20_v3 }
  0x95   :  { %v22_v5 = vmul.f32 %v21_v4, %v21_v4 }
  0x97   :  { %v23_v6 = vsel %vm15_vm0, %v22_v5, 0.0 }
  0x98   :  { %24 = vadd.xlane.f32.xlu0 %v23_v6 }
 0x125   :  { %v25_v7 = vpop.xlane.xlu0 %24 }
 0x126   :  { %v26_v8 = vmul.f32 0.03125, %v25_v7 }
 0x128   :  { %v27_v9 = vadd.f32 1e-12, %v26_v8 }
 0x12a   :  { %53 = vrsqrt.f32 %v27_v9 }
 0x134   :  { %v54_v10 = vpop.eup %53 }
 0x135   :  { %v29_v12 = vmul.f32 %v54_v10, %v21_v4 }
 0x137   :  { %v37_v14 = vmul.f32 %v51_v11, %v29_v12 }
 0x139   :  { %v45_v15 = vadd.f32 %v52_v13, %v37_v14 }
 0x13b   :  { %46 = vst.msk [vmem:[%s93_s3] sm:$0x3f] %vm15_vm0, %v45_v15 }

// kernel: conformer_encoder_forward.15
= control target key start
LH: loop header
LB: loop body
LE: loop exit
PB: predicated region body
PF: predicated region fallthrough
CT: control target
= control target key end

     0   :  { %vm28_vm0 = vcmask 259072   ;;  %v279_v8 = vmov 0.0   ;;  %vm280_vm1 = vmmov 0   ;;  %vm83_vm2 = vcmask 261120   ;;  %s365_s0 = inlined_call_operand.vmem [shape: f32[6,32], index: 0, kind: input, shape index: {}]   ;;  %s366_s3 = inlined_call_operand.vmem [shape: bf16[32,64], index: 3, kind: input, shape index: {}]   ;;  %s367_s1 = inlined_call_operand.vmem [shape: f32[1,32], index: 1, kind: input, shape index: {}]   ;;  %s368_s2 = inlined_call_operand.vmem [shape: f32[1,32], index: 2, kind: input, shape index: {}]   ;;  %s369_s5 = inlined_call_operand.vmem [shape: bf16[64,32], index: 5, kind: input, shape index: {}]   ;;  %s370_s4 = inlined_call_operand.vmem [shape: f32[1,64], index: 4, kind: input, shape index: {}]   ;;  %s371_s6 = inlined_call_operand.vmem [shape: f32[1,32], index: 6, kind: input, shape index: {}]   ;;  %s372_s7 = inlined_call_operand.vmem [shape: f32[6,32], index: 7, kind: output, shape index: {}]  }
   0x1   :  { %v324_v0 = vld [vmem:[%s365_s0] sm:$0x3f]  ;;  %245 = vmatprep.subr.bf16.mxu0 %v279_v8  ;;  %253 = vmatprep.subr.bf16.mxu1 %v279_v8  ;;  %v268_v9 = vld [vmem:[%s366_s3 + $0x8] sm:$0xff]   ;;  %v271_v22 = vld [vmem:[%s369_s5 + $0x10] sm:$0xff]   ;;  %vm174_vm3 = vcmask 523264  }
   0x2   :  { %v29_v1 = vsel %vm28_vm0, %v324_v0, 0.0  ;;  %v267_v7 = vld [vmem:[%s366_s3] sm:$0xff]   ;;  %249 = vmatprep.mubr.msk.bf16.mxu0 %vm280_vm1, %v279_v8  ;;  %261 = vmatprep.mubr.msk.bf16.mxu1 %vm280_vm1, %v279_v8  ;;  %v270_v21 = vld [vmem:[%s369_s5 + $0x8] sm:$0xff]   ;;  %v272_v23 = vld [vmem:[%s369_s5 + $0x18] sm:$0xff]  }
   0x3   :  { %30 = vadd.xlane.f32.xlu0 %v29_v1  ;;  %246 = vmatpush3.bf16.msra.mxu0 %v267_v7  ;;  %v224_v14 = vld [vmem:[%s367_s1] ss:$0 sm:$0xff] }
   0x4   :  { %247 = vmatprep.subr.bf16.mxu0 %v279_v8  ;;  %v225_v16 = vld [vmem:[%s368_s2] ss:$0 sm:$0xff] }
   0x5   :  { %v269_v20 = vld [vmem:[%s369_s5] sm:$0xff]  }
   0x6   :  { %254 = vmatpush3.bf16.msra.mxu1 %v269_v20  ;;  %v226_v24 = vld [vmem:[%s370_s4] ss:$0 sm:$0xff] }
   0x7   :  { %248 = vmatpush3.bf16.msra.mxu0 %v268_v9  ;;  %255 = vmatprep.subr.bf16.mxu1 %v279_v8  ;;  %v231_v36 = vld [vmem:[%s371_s6] ss:$0 sm:$0xff] }
   0xa   :  { %256 = vmatpush3.bf16.msra.mxu1 %v270_v21 }
   0xb   :  { %257 = vmatprep.subr.bf16.mxu1 %v279_v8 }
   0xe   :  { %258 = vmatpush3.bf16.msra.mxu1 %v271_v22 }
   0xf   :  { %259 = vmatprep.subr.bf16.mxu1 %v279_v8 }
  0x12   :  { %260 = vmatpush3.bf16.msra.mxu1 %v272_v23 }
  0x90   :  { %v31_v2 = vpop.xlane.xlu0 %30 }
  0x91   :  { %v33_v3 = vmul.f32 0.03125, %v31_v2 }
  0x93   :  { %v34_v4 = vsub.f32 %v324_v0, %v33_v3 }
  0x95   :  { %v35_v5 = vmul.f32 %v34_v4, %v34_v4 }
  0x97   :  { %v36_v6 = vsel %vm28_vm0, %v35_v5, 0.0 }
  0x98   :  { %37 = vadd.xlane.f32.xlu0 %v36_v6 }
 0x125   :  { %v38_v10 = vpop.xlane.xlu0 %37 }
 0x126   :  { %v39_v11 = vmul.f32 0.03125, %v38_v10 }
 0x128   :  { %v40_v12 = vadd.f32 1e-12, %v39_v11 }
 0x12a   :  { %273 = vrsqrt.f32 %v40_v12 }
 0x134   :  { %v274_v13 = vpop.eup %273 }
 0x135   :  { %v42_v15 = vmul.f32 %v274_v13, %v34_v4 }
 0x137   :  { %v50_v17 = vmul.f32 %v224_v14, %v42_v15 }
 0x139   :  { %v58_v18 = vadd.f32 %v225_v16, %v50_v17 }
 0x13b   :  { %v59_v19 = vpack.c.bf16 %v58_v18, %v58_v18 }
 0x13d   :  { %250 = vmatmul.mubr.msk.bf16.vlgmr.msra.gmra.mrb[0].mxu0 %vm83_vm2, %v59_v19 }
 0x210   :  { %v121_v25 = vpop.f32.mrb[0].mxu0 }
 0x211   :  { %v122_v26 = vadd.f32 %v226_v24, %v121_v25  ;;  %v251_v27 = vpop.f32.mrb[1].mxu0 }
 0x212   :  { %v124_v28 = vpop.f32.mrb[2].mxu0 }
 0x213   :  { %v230_v29 = vmul.f32 -1.442695, %v122_v26  ;;  %v252_v30 = vpop.f32.mrb[3].mxu0 }
 0x215   :  { %275 = vpow2.f32 %v230_v29 }
 0x21f   :  { %v276_v31 = vpop.eup %275 }
 0x220   :  { %v130_v32 = vadd.f32 1.0, %v276_v31 }
 0x222   :  { %277 = vrcp.f32 %v130_v32 }
 0x22c   :  { %v278_v33 = vpop.eup %277 }
 0x22d   :  { %v133_v34 = vmul.f32 %v278_v33, %v122_v26 }
 0x22f   :  { %v134_v35 = vpack.c.bf16 %v133_v34, %v133_v34 }
 0x231   :  { %262 = vmatmul.mubr.msk.bf16.vlgmr.msra.gmra.mrb[0].mxu1 %vm174_vm3, %v134_v35 }
 0x304   :  { %v212_v37 = vpop.f32.mrb[0].mxu1 }
 0x305   :  { %v213_v38 = vadd.f32 %v231_v36, %v212_v37  ;;  %v263_v39 = vpop.f32.mrb[1].mxu1 }
 0x306   :  { %v215_v40 = vpop.f32.mrb[2].mxu1 }
 0x307   :  { %v218_v41 = vadd.f32 %v213_v38, %v324_v0  ;;  %v264_v42 = vpop.f32.mrb[3].mxu1 }
 0x309   :  { %219 = vst.msk [vmem:[%s372_s7] sm:$0x3f] %vm28_vm0, %v218_v41 }

// kernel: conformer_encoder_forward.14
= control target key start
LH: loop header
LB: loop body
LE: loop exit
PB: predicated region body
PF: predicated region fallthrough
CT: control target
= control target key end

     0   :  { %s1226_s18 = smov 0   ;;  %s1372_s0 = inlined_call_operand.vmem [shape: f32[2,3,96], index: 0, kind: input, shape index: {}]   ;;  %s1373_s1 = inlined_call_operand.vmem [shape: f32[2,1,3], index: 1, kind: input, shape index: {}]   ;;  %s1374_s2 = inlined_call_operand.vmem [shape: f32[2,3,32], index: 2, kind: input, shape index: {}]   ;;  %s1375_s3 = inlined_call_operand.vmem [shape: bf16[32,32], index: 3, kind: input, shape index: {}]   ;;  %s1376_s4 = inlined_call_operand.vmem [shape: f32[1,32], index: 4, kind: input, shape index: {}]   ;;  %s1377_s5 = inlined_call_operand.vmem [shape: f32[2,3,32], index: 5, kind: output, shape index: {}]  }
   0x1 LB: > { %s1002_s19 = sadd.s32 4294967295, %s1179_s18   ;;  %p1006_p0 = scmp.ge.s32.totalorder %s1179_s18, 1  ;;  %s1179_s18 = sphi %s1226_s18, %s15_s18  }
   0x2   : > { %p203_p1 = scmp.lt.s32.totalorder %s1179_s18, 3 }
   0x4   : > { %p204_p2 = pnand %p1006_p0, %p203_p1 }
   0x5   : > { %p236_p3 = scmp.lt.s32.totalorder (!%p204_p2), %s1002_s19, 1  ;;  %v1181_v0 = vmov (!%p204_p2), 0.0   ;;  %vm1182_vm0 = vmmov (!%p204_p2), 0   ;;  %s1183_s24 = smov (!%p204_p2), 96   ;;  %vm272_vm1 = vcmask (!%p204_p2), 64512   ;;  %v321_v5 = vlaneseq (!%p204_p2) }
   0x6   : > { %207 = sbr.rel (%p204_p2) target bundleno = 2191 (0x88f), region = 40  ;;  %1049 = vmatprep.subr.bf16.mxu0 (!%p204_p2), %v1181_v0  ;;  %1051 = vmatprep.mubr.msk.bf16.mxu0 (!%p204_p2), %vm1182_vm0, %v1181_v0  ;;  %s1184_s25 = smov (!%p204_p2), 64   ;;  %v1186_v9 = vmov (!%p204_p2), 0   ;;  %vm327_vm4 = vcmask (!%p204_p2), 18432   ;;  %vm347_vm5 = vcmask (!%p204_p2), 1040384   ;;  %vm348_vm6 = vcmask (!%p204_p2), 1041408  }
   0x7   : > { %1061 = vmatprep.subr.bf16.mxu1 (!%p204_p2), %v1181_v0  ;;  %1063 = vmatprep.mubr.msk.bf16.mxu1 (!%p204_p2), %vm1182_vm0, %v1181_v0  ;;  %s1185_s26 = smov (!%p204_p2), 88   ;;  %v322_v7 = vshrl.u32 (!%p204_p2), %v321_v5, 7  ;;  %v1187_v20 = vmov (!%p204_p2), 65535   ;;  %s1188_s30 = smov (!%p204_p2), 120   ;;  %vm343_vm7 = vcmask (!%p204_p2), 23552   ;;  %vm398_vm8 = vcmask (!%p204_p2), 1043456  }
   0x8   : > { %v349_v21 = vsel (!%p204_p2), %vm347_vm5, 4294967295, %v1187_v20  ;;  %s1189_s6 = smov (!%p204_p2), 80   ;;  %s1190_s7 = smov (!%p204_p2), 112   ;;  %v255_v40 = vld [vmem:[%s1375_s3] sm:$0xf] (!%p204_p2)  ;;  %vm926_vm9 = vcmask (!%p204_p2), 256000  }
   0x9   : > { %v323_v8 = vsub.s32 (!%p204_p2), 0, %v322_v7  ;;  %v1266_v22 = vsel (!%p204_p2), %vm348_vm6, %v349_v21, 0  ;;  %v400_v41 = vsel (!%p204_p2), %vm398_vm8, %v255_v40, 0  ;;  %s1191_s10 = smov (!%p204_p2), 48   ;;  %s1192_s11 = smov (!%p204_p2), 72  }
   0xa   : > { %1062 = vmatpush3.bf16.msra.mxu1 (!%p204_p2), %v400_v41  ;;  %s1193_s12 = smov (!%p204_p2), 104   ;;  %s1194_s13 = smov (!%p204_p2), 56   ;;  %v257_v41 = vld [vmem:[%s1375_s3 + $0x8] sm:$0xf] (!%p204_p2) }
   0xb   : > { %1073 = vmatprep.subr.bf16.mxu1 (!%p204_p2), %v1181_v0 }
   0xd   : > { %s1379_s19 = smov (!%p236_p3, %s1002_s19), 1 }
   0xe   : > { %s1240_s20 = sshll.u32 %s1379_s19, 2  ;;  %s242_s29 = scalar_lea.vmem %s1373_s1, %s1379_s19 }
   0xf   : > { %s239_s23 = scalar_lea.vmem %s1372_s0, %s1240_s20  ;;  %v253_v6 = vld [vmem:[%s242_s29] sm:$0x1]  ;;  %s1195_s19 = smov 40  }
  0x10   : > { %v252_v1 = vld [vmem:[%s239_s23] sm:$0x7]  ;;  %vm254_vm2 = vcmp.gt.f32.partialorder %v253_v6, 0.5 }
  0x11   : > { %v1246_v2 = vpack.c.bf16 %v252_v1, %v252_v1  ;;  %v320_v10 = vsel %vm254_vm2, 1, %v1186_v9 }
  0x12   : > { %v1260_v11 = vrot.slane %v320_v10, %v323_v8 }
  0x13   : > { %270 = vrot.lane.b32.xlu0 %v1246_v2, %s1183_s24  ;;  %341 = vrot.lane.b32.xlu1 %v1246_v2, %s1184_s25  ;;  %s246_s25 = scalar_lea.vmem %s1374_s2, %s1240_s20 }
  0x14   : > { %vm325_vm3 = vcmp.eq.s32.totalorder %v1260_v11, 1  ;;  %v259_v11 = vld [vmem:[%s246_s25] sm:$0x7] }
  0x17   : > { %445 = vrot.lane.b32.xlu1 %v1246_v2, %s1185_s26 }
  0x85   : > { %v271_v3 = vpop.permute.xlu0 %270  ;;  %v342_v19 = vpop.permute.xlu1 %341 }
  0x86   : > { %v277_v4 = vsel %vm272_vm1, %v271_v3, 0  ;;  %v352_v23 = vand.u32 %v1266_v22, %v342_v19 }
  0x87   : > { %1050 = vmatpush3.bf16.xpose.msra.mxu0 %v277_v4 }
  0x88   : > { %1055 = vmatprep.subr.bf16.mxu0 %v1181_v0 }
  0x89   : > { %v446_v29 = vpop.permute.xlu1 %445 }
  0x8a   : > { %v451_v36 = vsel %vm272_vm1, %v446_v29, 0 }
  0x8e   : > { %1052 = vmatmul.mubr.msk.bf16.vlgmr.msra.gmra.mrb[0].mxu0 %vm272_vm1, %v1246_v2 }
  0x8f   : > { %1057 = vmatprep.mubr.msk.bf16.mxu0 %vm1182_vm0, %v1181_v0  ;;  %1056 = vmatpush3.bf16.msra.mxu0 %v352_v23 }
  0x90   : > { %1067 = vmatprep.subr.bf16.mxu0 %v1181_v0 }
 0x161   : > { %v313_v12 = vpop.f32.mrb[0].mxu0 }
 0x162   : > { %v319_v13 = vmul.f32 0.35355338, %v313_v12  ;;  %v1053_v14 = vpop.f32.mrb[1].mxu0 }
 0x163   : > { %v316_v15 = vpop.f32.mrb[2].mxu0 }
 0x164   : > { %v1054_v16 = vpop.f32.mrb[3].mxu0  ;;  %v326_v17 = vsel %vm325_vm3, %v319_v13, -3.4028235e+38 }
 0x165   : > { %v328_v18 = vsel %vm327_vm4, %v326_v17, -inf }
 0x166   : > { %329 = vmax.xlane.f32.xlu0 %v328_v18 }
 0x1f3   : > { %v330_v24 = vpop.xlane.xlu0 %329 }
 0x1f4   : > { %v331_v25 = vsub.f32 %v326_v17, %v330_v24 }
 0x1f6   : > { %v332_v26 = vmul.f32 1.442695, %v331_v25 }
 0x1f8   : > { %1157 = vpow2.f32 %v332_v26 }
 0x202   : > { %v1158_v27 = vpop.eup %1157 }
 0x203   : > { %v334_v28 = vsel %vm327_vm4, %v1158_v27, 0.0 }
 0x204   : > { %335 = vadd.xlane.f32.xlu1 %v334_v28  ;;  %v256_v28 = vld [vmem:[%s1375_s3 + $0x4] sm:$0xf] }
 0x205   : > { %v561_v29 = vsel %vm398_vm8, %v256_v28, 0 }
 0x215   : > { %443 = vrot.lane.b32.xlu1 %v1246_v2, %s1188_s30  ;;  %s250_s30 = scalar_lea.vmem %s1377_s5, %s1240_s20 }
 0x219   : > { %606 = vrot.lane.b32.xlu1 %v1246_v2, %s1189_s6 }
 0x21d   : > { %604 = vrot.lane.b32.xlu1 %v1246_v2, %s1190_s7 }
 0x291   : > { %v336_v30 = vpop.xlane.xlu1 %335 }
 0x292   : > { %1159 = vrcp.f32 %v336_v30 }
 0x295   : > { %v444_v34 = vpop.permute.xlu1 %443 }
 0x299   : > { %v607_v37 = vpop.permute.xlu1 %606 }
 0x29a   : > { %v612_v38 = vsel %vm272_vm1, %v607_v37, 0 }
 0x29c   : > { %v1160_v31 = vpop.eup %1159 }
 0x29d   : > { %v338_v32 = vmul.f32 %v1160_v31, %v1158_v27  ;;  %v605_v39 = vpop.permute.xlu1 %604 }
 0x29f   : > { %v339_v33 = vsel %vm325_vm3, %v338_v32, 0.0 }
 0x2a0   : > { %v340_v35 = vpack.c.bf16 %v339_v33, %v339_v33 }
 0x2a2   : > { %1058 = vmatmul.mubr.msk.bf16.vlgmr.msra.gmra.mrb[4].mxu0 %vm343_vm7, %v340_v35 }
 0x2a3   : > { %1068 = vmatpush3.bf16.xpose.msra.mxu0 %v451_v36  ;;  %1069 = vmatprep.mubr.msk.bf16.mxu0 %vm1182_vm0, %v1181_v0 }
 0x2a4   : > { %1085 = vmatprep.subr.bf16.mxu0 %v1181_v0 }
 0x2aa   : > { %1070 = vmatmul.mubr.msk.bf16.vlgmr.msra.gmra.mrb[8].mxu0 %vm272_vm1, %v444_v34 }
 0x2ab   : > { %1086 = vmatpush3.bf16.xpose.msra.mxu0 %v612_v38  ;;  %1087 = vmatprep.mubr.msk.bf16.mxu0 %vm1182_vm0, %v1181_v0 }
 0x2ac   : > { %1091 = vmatprep.subr.bf16.mxu0 %v1181_v0 }
 0x2b2   : > { %1088 = vmatmul.mubr.msk.bf16.vlgmr.msra.gmra.mrb[12].mxu0 %vm272_vm1, %v605_v39 }
 0x2b3   : > { %1093 = vmatprep.mubr.msk.bf16.mxu0 %vm1182_vm0, %v1181_v0 }
 0x375   : > { %v388_v42 = vpop.f32.mrb[4].mxu0 }
 0x376   : > { %v394_v43 = vpack.c.bf16 %v388_v42, %v388_v42  ;;  %v1059_v44 = vpop.f32.mrb[5].mxu0 }
 0x377   : > { %v391_v45 = vpop.f32.mrb[6].mxu0 }
 0x378   : > { %v1060_v46 = vpop.f32.mrb[7].mxu0  ;;  %1064 = vmatmul.mubr.msk.bf16.vlgmr.msra.gmra.mrb[0].mxu1 %vm272_vm1, %v394_v43  ;;  %v722_v45 = vsel %vm398_vm8, %v257_v41, 0 }
 0x379   : > { %1075 = vmatprep.mubr.msk.bf16.mxu1 %vm1182_vm0, %v1181_v0 }
 0x37d   : > { %v487_v47 = vpop.f32.mrb[8].mxu0 }
 0x37e   : > { %v1071_v48 = vpop.f32.mrb[9].mxu0  ;;  %v493_v58 = vmul.f32 0.35355338, %v487_v47 }
 0x37f   : > { %v490_v49 = vpop.f32.mrb[10].mxu0 }
 0x380   : > { %v1072_v50 = vpop.f32.mrb[11].mxu0  ;;  %v494_v59 = vsel %vm325_vm3, %v493_v58, -3.4028235e+38 }
 0x381   : > { %v495_v60 = vsel %vm327_vm4, %v494_v59, -inf }
 0x385   : > { %v648_v51 = vpop.f32.mrb[12].mxu0 }
 0x386   : > { %v654_v52 = vmul.f32 0.35355338, %v648_v51  ;;  %v1089_v53 = vpop.f32.mrb[13].mxu0 }
 0x387   : > { %v651_v54 = vpop.f32.mrb[14].mxu0 }
 0x388   : > { %v1090_v55 = vpop.f32.mrb[15].mxu0  ;;  %v655_v56 = vsel %vm325_vm3, %v654_v52, -3.4028235e+38 }
 0x389   : > { %v656_v57 = vsel %vm327_vm4, %v655_v56, -inf }
 0x38a   : > { %657 = vmax.xlane.f32.xlu0 %v656_v57 }
 0x3a0   : > { %669 = vrot.lane.b32.xlu0 %v1246_v2, %s1191_s10 }
 0x3a4   : > { %767 = vrot.lane.b32.xlu0 %v1246_v2, %s1192_s11 }
 0x3a8   : > { %765 = vrot.lane.b32.xlu0 %v1246_v2, %s1193_s12 }
 0x3c7   : > { %496 = vmax.xlane.f32.xlu0 %v495_v60 }
 0x417   : > { %v658_v61 = vpop.xlane.xlu0 %657 }
 0x418   : > { %v659_v62 = vsub.f32 %v655_v56, %v658_v61 }
 0x41a   : > { %v660_v63 = vmul.f32 1.442695, %v659_v62 }
 0x41b   : > { %v670_v1 = vpop.permute.xlu0 %669 }
 0x41c   : > { %1161 = vpow2.f32 %v660_v63  ;;  %v675_v3 = vand.u32 %v670_v1, %v1266_v22 }
 0x41e   : > { %1092 = vmatpush3.bf16.msra.mxu0 %v675_v3 }
 0x41f   : > { %1103 = vmatprep.subr.bf16.mxu0 %v1181_v0  ;;  %v768_v6 = vpop.permute.xlu0 %767 }
 0x420   : > { %v773_v18 = vsel %vm272_vm1, %v768_v6, 0 }
 0x423   : > { %v766_v7 = vpop.permute.xlu0 %765 }
 0x426   : > { %v1162_v4 = vpop.eup %1161 }
 0x427   : > { %v662_v5 = vsel %vm327_vm4, %v1162_v4, 0.0 }
 0x428   : > { %663 = vadd.xlane.f32.xlu1 %v662_v5 }
 0x454   : > { %v497_v8 = vpop.xlane.xlu0 %496 }
 0x455   : > { %v498_v9 = vsub.f32 %v494_v59, %v497_v8  ;;  %v258_v59 = vld [vmem:[%s1375_s3 + $0xc] sm:$0xf] }
 0x456   : > { %v883_v61 = vsel %vm398_vm8, %v258_v59, 0 }
 0x457   : > { %v499_v10 = vmul.f32 1.442695, %v498_v9 }
 0x459   : > { %1163 = vpow2.f32 %v499_v10 }
 0x463   : > { %v1164_v12 = vpop.eup %1163 }
 0x464   : > { %v501_v13 = vsel %vm327_vm4, %v1164_v12, 0.0 }
 0x465   : > { %502 = vadd.xlane.f32.xlu1 %v501_v13 }
 0x476   : > { %508 = vrot.lane.b32.xlu1 %v1246_v2, %s1194_s13 }
 0x4b5   : > { %v664_v14 = vpop.xlane.xlu1 %663 }
 0x4b6   : > { %1165 = vrcp.f32 %v664_v14 }
 0x4c0   : > { %v1166_v15 = vpop.eup %1165 }
 0x4c1   : > { %v666_v16 = vmul.f32 %v1166_v15, %v1162_v4  ;;  %v1010_v4 = vld [vmem:[%s1376_s4] ss:$0 sm:$0xff] }
 0x4c2   : > { %v267_v5 = vadd.f32 %v1010_v4, %v259_v11 }
 0x4c3   : > { %v667_v17 = vsel %vm325_vm3, %v666_v16, 0.0 }
 0x4c4   : > { %v668_v19 = vpack.c.bf16 %v667_v17, %v667_v17 }
 0x4c6   : > { %1094 = vmatmul.mubr.msk.bf16.vlgmr.msra.gmra.mrb[16].mxu0 %vm343_vm7, %v668_v19 }
 0x4c7   : > { %1104 = vmatpush3.bf16.xpose.msra.mxu0 %v773_v18  ;;  %1105 = vmatprep.mubr.msk.bf16.mxu0 %vm1182_vm0, %v1181_v0 }
 0x4ce   : > { %1106 = vmatmul.mubr.msk.bf16.vlgmr.msra.gmra.mrb[20].mxu0 %vm272_vm1, %v766_v7 }
 0x4f2   : > { %v503_v20 = vpop.xlane.xlu1 %502 }
 0x4f3   : > { %1167 = vrcp.f32 %v503_v20 }
 0x4f6   : > { %v509_v21 = vpop.permute.xlu1 %508 }
 0x4f7   : > { %v514_v23 = vand.u32 %v509_v21, %v1266_v22 }
 0x4f9   : > { %1074 = vmatpush3.bf16.msra.mxu1 %v514_v23 }
 0x4fa   : > { %1079 = vmatprep.subr.bf16.mxu1 %v1181_v0 }
 0x4fd   : > { %v1168_v24 = vpop.eup %1167 }
 0x4fe   : > { %v505_v25 = vmul.f32 %v1168_v24, %v1164_v12 }
 0x500   : > { %v506_v26 = vsel %vm325_vm3, %v505_v25, 0.0 }
 0x501   : > { %v507_v27 = vpack.c.bf16 %v506_v26, %v506_v26 }
 0x503   : > { %1076 = vmatmul.mubr.msk.bf16.vlgmr.msra.gmra.mrb[4].mxu1 %vm343_vm7, %v507_v27 }
 0x504   : > { %1081 = vmatprep.mubr.msk.bf16.mxu1 %vm1182_vm0, %v1181_v0  ;;  %1080 = vmatpush3.bf16.msra.mxu1 %v561_v29 }
 0x505   : > { %1097 = vmatprep.subr.bf16.mxu1 %v1181_v0 }
 0x599   : > { %v711_v30 = vpop.f32.mrb[16].mxu0 }
 0x59a   : > { %v1095_v31 = vpop.f32.mrb[17].mxu0  ;;  %v717_v48 = vpack.c.bf16 %v711_v30, %v711_v30 }
 0x59b   : > { %v714_v32 = vpop.f32.mrb[18].mxu0 }
 0x59c   : > { %v1096_v33 = vpop.f32.mrb[19].mxu0 }
 0x5a1   : > { %v809_v34 = vpop.f32.mrb[20].mxu0 }
 0x5a2   : > { %v815_v35 = vmul.f32 0.35355338, %v809_v34  ;;  %v1107_v36 = vpop.f32.mrb[21].mxu0 }
 0x5a3   : > { %v812_v37 = vpop.f32.mrb[22].mxu0 }
 0x5a4   : > { %v1108_v38 = vpop.f32.mrb[23].mxu0  ;;  %v816_v39 = vsel %vm325_vm3, %v815_v35, -3.4028235e+38 }
 0x5a5   : > { %v817_v40 = vsel %vm327_vm4, %v816_v39, -inf }
 0x5a6   : > { %818 = vmax.xlane.f32.xlu1 %v817_v40 }
 0x5d6   : > { %v550_v42 = vpop.f32.mrb[4].mxu1 }
 0x5d7   : > { %v556_v43 = vpack.c.bf16 %v550_v42, %v550_v42  ;;  %v1077_v44 = vpop.f32.mrb[5].mxu1 }
 0x5d8   : > { %v553_v46 = vpop.f32.mrb[6].mxu1 }
 0x5d9   : > { %v1078_v47 = vpop.f32.mrb[7].mxu1  ;;  %1082 = vmatmul.mubr.msk.bf16.vlgmr.msra.gmra.mrb[0].mxu1 %vm272_vm1, %v556_v43 }
 0x5da   : > { %1098 = vmatpush3.bf16.msra.mxu1 %v722_v45  ;;  %1099 = vmatprep.mubr.msk.bf16.mxu1 %vm1182_vm0, %v1181_v0 }
 0x5db   : > { %1109 = vmatprep.subr.bf16.mxu1 %v1181_v0 }
 0x5e5   : > { %1100 = vmatmul.mubr.msk.bf16.vlgmr.msra.gmra.mrb[0].mxu1 %vm272_vm1, %v717_v48 }
 0x5e6   : > { %1111 = vmatprep.mubr.msk.bf16.mxu1 %vm1182_vm0, %v1181_v0 }
 0x633   : > { %v819_v49 = vpop.xlane.xlu1 %818 }
 0x634   : > { %v820_v50 = vsub.f32 %v816_v39, %v819_v49 }
 0x636   : > { %v821_v51 = vmul.f32 1.442695, %v820_v50 }
 0x638   : > { %1169 = vpow2.f32 %v821_v51 }
 0x642   : > { %v1170_v52 = vpop.eup %1169 }
 0x643   : > { %v823_v53 = vsel %vm327_vm4, %v1170_v52, 0.0 }
 0x644   : > { %824 = vadd.xlane.f32.xlu0 %v823_v53 }
 0x65a   : > { %830 = vrot.lane.b32.xlu0 %v1246_v2, %s1195_s19 }
 0x6d1   : > { %v825_v54 = vpop.xlane.xlu0 %824 }
 0x6d2   : > { %1171 = vrcp.f32 %v825_v54 }
 0x6d5   : > { %v831_v55 = vpop.permute.xlu0 %830 }
 0x6d6   : > { %v836_v56 = vand.u32 %v831_v55, %v1266_v22 }
 0x6d8   : > { %1110 = vmatpush3.bf16.msra.mxu1 %v836_v56 }
 0x6d9   : > { %1115 = vmatprep.subr.bf16.mxu1 %v1181_v0 }
 0x6dc   : > { %v1172_v57 = vpop.eup %1171 }
 0x6dd   : > { %v827_v58 = vmul.f32 %v1172_v57, %v1170_v52 }
 0x6df   : > { %v828_v60 = vsel %vm325_vm3, %v827_v58, 0.0 }
 0x6e0   : > { %v829_v2 = vpack.c.bf16 %v828_v60, %v828_v60 }
 0x6e2   : > { %1112 = vmatmul.mubr.msk.bf16.vlgmr.msra.gmra.mrb[8].mxu1 %vm343_vm7, %v829_v2 }
 0x6e3   : > { %1116 = vmatpush3.bf16.msra.mxu1 %v883_v61  ;;  %1117 = vmatprep.mubr.msk.bf16.mxu1 %vm1182_vm0, %v1181_v0 }
 0x7b5   : > { %v872_v22 = vpop.f32.mrb[8].mxu1 }
 0x7b6   : > { %v878_v62 = vpack.c.bf16 %v872_v22, %v872_v22  ;;  %v1113_v63 = vpop.f32.mrb[9].mxu1 }
 0x7b7   : > { %v875_v1 = vpop.f32.mrb[10].mxu1 }
 0x7b8   : > { %v1114_v3 = vpop.f32.mrb[11].mxu1  ;;  %1118 = vmatmul.mubr.msk.bf16.vlgmr.msra.gmra.mrb[0].mxu1 %vm272_vm1, %v878_v62 }
 0x88b   : > { %v919_v0 = vpop.f32.mrb[0].mxu1 }
 0x88c   : > { %v1121_v6 = vadd.f32 %v919_v0, %v267_v5  ;;  %v1119_v7 = vpop.f32.mrb[1].mxu1 }
 0x88d   : > { %v922_v8 = vpop.f32.mrb[2].mxu1 }
 0x88e   : > { %927 = vst.msk [vmem:[%s250_s30] sm:$0x7] %vm926_vm9, %v1121_v6  ;;  %v1120_v9 = vpop.f32.mrb[3].mxu1 }
 0x88f PF: > { %s15_s18 = sadd.s32 1, %s1179_s18  }
 0x890   : > { %p12_p4 = scmp.ge.s32.totalorder %s15_s18, 4  }
 0x892   :  { %14 = sbr.rel (!%p12_p4) target bundleno = 1 (0x1), region = 76 }

</bundles_post_ra>
